<compile_context>
chip_gen: v5e
topology: v5e:2x2
jax: 0.10.0
libtpu: 0.0.40
codegen_flags: <defaults>
</compile_context>

<pallas_src>
import jax
import jax.numpy as jnp
from jax.experimental import pallas as pl
from jax.experimental.pallas import tpu as pltpu


def _round_up(n, m):
    return (n + m - 1) // m * m


def _attflat_kernel(x_ref, bias_ref, w1_ref, b1_ref, w2_ref, b2_ref,
                    wm_ref, bm_ref, out_ref):
    x = x_ref[...]                                   # (b_blk, S, H) f32
    b_blk, seq, hid = x.shape
    glimpses = w2_ref.shape[1]
    mm_dtype = w1_ref.dtype                          # bf16 (MXU-native)

    # --- MLP on the collapsed (b_blk*S, H) slab; S % 8 == 0 so the collapse is layout-free.
    # TODO(synk): dropout_r applies only in training; eval-mode forward => identity (no RNG).
    x2d = x.reshape(b_blk * seq, hid)
    h1 = jnp.dot(x2d.astype(mm_dtype), w1_ref[...],
                 preferred_element_type=jnp.float32) + b1_ref[...]
    h1 = jnp.maximum(h1, 0.0)                        # relu kept in f32 (v5e-safe)
    att = jnp.dot(h1.astype(mm_dtype), w2_ref[...],
                  preferred_element_type=jnp.float32) + b2_ref[...]
    att = att.reshape(b_blk, seq, glimpses)          # (b_blk, S, G)

    # --- masked_fill as an additive 0 / -1e9 bias (pre-scaled on the host).
    att = att + bias_ref[...]                        # (b_blk, S, 1) broadcast over G

    # --- softmax over the sequence axis (torch dim=1); exact divide, f32 throughout.
    att = att - jnp.max(att, axis=1, keepdims=True)
    e = jnp.exp(att)
    att = e / jnp.sum(e, axis=1, keepdims=True)      # (b_blk, S, G)

    # --- glimpse-weighted sums on the VPU/XLU (no tiny batched MXU matmuls, MXU slot freed).
    pieces = []
    for g in range(glimpses):                        # static unroll, G is small
        p = jnp.sum(att[:, :, g:g + 1] * x, axis=1, keepdims=True)    # (b_blk, 1, H)
        pieces.append(p.reshape(b_blk, hid))                           # (b_blk, H)
    x_atted = jnp.concatenate(pieces, axis=1)        # (b_blk, G*H), glimpse-major

    # --- linear_merge: ONE (b_blk, G*H) @ (G*H, 2H) matmul, lane-dense output rows.
    out_ref[...] = (jnp.dot(x_atted.astype(mm_dtype), wm_ref[...],
                            preferred_element_type=jnp.float32) + bm_ref[...])


def attflat(x, x_mask, params, *, glimpses, b_blk=None,
            matmul_dtype=jnp.bfloat16, vmem_limit_bytes=48 * 1024 * 1024):
    """AttFlat forward.

    x:      (B, S, H) float32
    x_mask: mask with B*S elements ((B,1,1,S), (B,S) or (B,S,1)); nonzero = masked padding.
    Returns (B, 2*H) float32.
    """
    B, S, H = x.shape
    w1, b1, w2, b2, wm, bm = params
    MID = w1.shape[1]
    OUT = wm.shape[-1]                               # 2*H

    # Additive mask bias, pre-scaled on the host (folds masked_fill into one add in-kernel).
    bias = x_mask.reshape(B, S, 1).astype(jnp.float32) * jnp.float32(-1e9)

    # Pad S to a multiple of 8 (fully-masked rows) so the in-kernel collapse is layout-free.
    S_pad = _round_up(S, 8)
    if S_pad != S:
        x = jnp.pad(x, ((0, 0), (0, S_pad - S), (0, 0)))
        bias = jnp.pad(bias, ((0, 0), (0, S_pad - S), (0, 0)), constant_values=-1e9)

    # Batch-block size: target >= 256 rows for the collapsed MLP matmul (fills the 256-wide
    # v6e/v7x MXU; >= 128 on v5e), never larger than the padded batch.  At production batch
    # sizes keep num_blocks >= 2 and even so both v7x TensorCores get grid steps.
    if b_blk is None:
        b_blk = _round_up(max(8, pl.cdiv(256, S_pad)), 8)
    b_blk = min(_round_up(b_blk, 8), _round_up(B, 8))

    num_blocks = pl.cdiv(B, b_blk)
    B_pad = num_blocks * b_blk
    if B_pad != B:                                   # padded rows: zero x, fully masked
        x = jnp.pad(x, ((0, B_pad - B), (0, 0), (0, 0)))
        bias = jnp.pad(bias, ((0, B_pad - B), (0, 0), (0, 0)), constant_values=-1e9)

    # bf16 weights in HBM: halves weight DMA bytes + VMEM; bias vectors stay f32 (post-MXU add).
    w1 = w1.astype(matmul_dtype)
    w2 = w2.astype(matmul_dtype)
    wm = wm.astype(matmul_dtype)

    # Grid-invariant weights: constant index_map + single buffer (double-buffering them
    # only wastes VMEM — significant against v7x's 64 MiB at production sizes).
    def weight_spec(shape):
        return pl.BlockSpec(shape, lambda b: (0, 0), pipeline_mode=pl.Buffered(1))

    out = pl.pallas_call(
        _attflat_kernel,
        out_shape=jax.ShapeDtypeStruct((B_pad, OUT), jnp.float32),
        grid_spec=pl.GridSpec(
            grid=(num_blocks,),
            in_specs=[
                pl.BlockSpec((b_blk, S_pad, H), lambda b: (b, 0, 0)),   # x (f32)
                pl.BlockSpec((b_blk, S_pad, 1), lambda b: (b, 0, 0)),   # mask bias (f32)
                weight_spec((H, MID)),                                   # W1 (bf16)
                weight_spec((1, MID)),                                   # b1 (f32)
                weight_spec((MID, glimpses)),                            # W2 (bf16)
                weight_spec((1, glimpses)),                              # b2 (f32)
                weight_spec((glimpses * H, OUT)),                        # Wm (bf16)
                weight_spec((1, OUT)),                                   # bm (f32)
            ],
            out_specs=pl.BlockSpec((b_blk, OUT), lambda b: (b, 0)),
        ),
        compiler_params=pltpu.CompilerParams(
            dimension_semantics=("parallel",),       # v7x: 2 TCs split the batch blocks
            vmem_limit_bytes=vmem_limit_bytes),
    )(x, bias, w1, b1.reshape(1, MID), w2, b2.reshape(1, glimpses),
      wm, bm.reshape(1, OUT))
    return out[:B]


def attflat_reference(x, x_mask, params, *, glimpses, matmul_dtype=None):
    """Plain-JAX reference of the PyTorch forward (eval mode).

    matmul_dtype=None     -> exact f32 reference (the module spec).
    matmul_dtype=bfloat16 -> same matmul-input quantization as the kernel (tight check).
    """
    w1, b1, w2, b2, wm, bm = params
    B, S, H = x.shape

    def mm(a, w):
        if matmul_dtype is not None:
            a, w = a.astype(matmul_dtype), w.astype(matmul_dtype)
        return jnp.dot(a, w, preferred_element_type=jnp.float32)

    mask = x_mask.reshape(B, S, 1).astype(jnp.float32)
    h1 = jnp.maximum(mm(x.reshape(B * S, H), w1) + b1, 0.0)
    att = (mm(h1, w2) + b2).reshape(B, S, glimpses)
    att = jnp.where(mask > 0.5, -1e9, att)
    att = jax.nn.softmax(att, axis=1)
    pieces = [jnp.sum(att[:, :, g:g + 1] * x, axis=1) for g in range(glimpses)]
    x_atted = jnp.concatenate(pieces, axis=1)
    return mm(x_atted, wm) + bm


if __name__ == "__main__":
    # args: hidden_size=32, flat_mlp_size=64, flat_glimpses=2, dropout_r (eval => identity)
    B, S, H, MID, G = 16, 8, 32, 64, 2
    OUT = 2 * H

    key = jax.random.PRNGKey(0)
    ks = jax.random.split(key, 8)
    x = jax.random.normal(ks[0], (B, S, H), dtype=jnp.float32)

    # deterministic synthetic parameters (not a checkpoint)
    w1 = jax.random.normal(ks[1], (H, MID), dtype=jnp.float32) * 0.05
    b1 = jax.random.normal(ks[2], (MID,), dtype=jnp.float32) * 0.05
    w2 = jax.random.normal(ks[3], (MID, G), dtype=jnp.float32) * 0.05
    b2 = jax.random.normal(ks[4], (G,), dtype=jnp.float32) * 0.05
    wm = jax.random.normal(ks[5], (G * H, OUT), dtype=jnp.float32) * 0.05
    bm = jax.random.normal(ks[6], (OUT,), dtype=jnp.float32) * 0.05
    params = (w1, b1, w2, b2, wm, bm)

    # torch x_mask is (B,1,1,S) bool; after squeeze/unsqueeze it acts per (b, s).
    # Variable valid lengths per example; 1.0 = masked padding position.
    lengths = jax.random.randint(ks[7], (B,), minval=3, maxval=S + 1)
    pos = jnp.arange(S)[None, :]
    x_mask = (pos >= lengths[:, None]).astype(jnp.float32)[:, :, None]   # (B, S, 1)

    out = attflat(x, x_mask, params, glimpses=G)
    out = jax.block_until_ready(out)
    assert out.shape == (B, OUT)

    # Tight check vs a reference using the SAME bf16 matmul-input quantization.
    ref_bf16 = attflat_reference(x, x_mask, params, glimpses=G, matmul_dtype=jnp.bfloat16)
    err_bf16 = jnp.max(jnp.abs(out - ref_bf16))
    assert jnp.allclose(out, ref_bf16, atol=5e-4, rtol=5e-4), (
        f"kernel vs bf16-matched reference: max |diff| = {err_bf16}")

    # Faithfulness check vs the pure-f32 PyTorch-equivalent forward
    # (bf16 MXU inputs introduce ~1e-3-level quantization).
    ref_f32 = attflat_reference(x, x_mask, params, glimpses=G)
    err_f32 = jnp.max(jnp.abs(out - ref_f32))
    assert jnp.allclose(out, ref_f32, atol=2e-2, rtol=2e-2), (
        f"kernel vs f32 reference: max |diff| = {err_f32}")

    print("KERNEL_OK")
</pallas_src>

<mosaic_0001>
module attributes {stable_mosaic.version = 11 : i64} {
  func.func @_attflat_kernel(%arg0: i32, %arg1: memref<16x8x32xf32, #tpu.memory_space<vmem>>, %arg2: memref<16x8x1xf32, #tpu.memory_space<vmem>>, %arg3: memref<32x64xbf16, #tpu.memory_space<vmem>>, %arg4: memref<1x64xf32, #tpu.memory_space<vmem>>, %arg5: memref<64x2xbf16, #tpu.memory_space<vmem>>, %arg6: memref<1x2xf32, #tpu.memory_space<vmem>>, %arg7: memref<64x64xbf16, #tpu.memory_space<vmem>>, %arg8: memref<1x64xf32, #tpu.memory_space<vmem>>, %arg9: memref<16x64xf32, #tpu.memory_space<vmem>>) attributes {dimension_semantics = [#tpu.dimension_semantics<parallel>], iteration_bounds = array<i64: 1>, scalar_prefetch = 0 : i64, scratch_operands = 0 : i64, tpu.core_type = #tpu.core_type<tc>, window_params = [{transform_indices = @transform_0, window_bounds = array<i64: 16, 8, 32>}, {transform_indices = @transform_1, window_bounds = array<i64: 16, 8, 1>}, {pipeline_mode = #tpu.pipeline_mode<synchronous>, transform_indices = @transform_2, window_bounds = array<i64: 32, 64>}, {pipeline_mode = #tpu.pipeline_mode<synchronous>, transform_indices = @transform_3, window_bounds = array<i64: 1, 64>}, {pipeline_mode = #tpu.pipeline_mode<synchronous>, transform_indices = @transform_4, window_bounds = array<i64: 64, 2>}, {pipeline_mode = #tpu.pipeline_mode<synchronous>, transform_indices = @transform_5, window_bounds = array<i64: 1, 2>}, {pipeline_mode = #tpu.pipeline_mode<synchronous>, transform_indices = @transform_6, window_bounds = array<i64: 64, 64>}, {pipeline_mode = #tpu.pipeline_mode<synchronous>, transform_indices = @transform_7, window_bounds = array<i64: 1, 64>}, {transform_indices = @transform_8, window_bounds = array<i64: 16, 64>}]} {
    %c0 = arith.constant 0 : index
    %c0_0 = arith.constant 0 : index
    %c0_1 = arith.constant 0 : index
    %0 = vector.load %arg1[%c0, %c0_0, %c0_1] : memref<16x8x32xf32, #tpu.memory_space<vmem>>, vector<16x8x32xf32>
    %1 = vector.shape_cast %0 : vector<16x8x32xf32> to vector<128x32xf32>
    %2 = arith.truncf %1 : vector<128x32xf32> to vector<128x32xbf16>
    %c0_2 = arith.constant 0 : index
    %c0_3 = arith.constant 0 : index
    %3 = vector.load %arg3[%c0_2, %c0_3] : memref<32x64xbf16, #tpu.memory_space<vmem>>, vector<32x64xbf16>
    %cst = arith.constant dense<0.000000e+00> : vector<128x64xf32>
    %4 = tpu.matmul %2, %3, %cst {dimension_numbers = #tpu.dot_dimension_numbers<[1], [0], [0], [1], [0, 0, 1, 1], [], []>} : vector<128x32xbf16>, vector<32x64xbf16>, vector<128x64xf32> -> vector<128x64xf32>
    %c0_4 = arith.constant 0 : index
    %c0_5 = arith.constant 0 : index
    %5 = vector.load %arg4[%c0_4, %c0_5] : memref<1x64xf32, #tpu.memory_space<vmem>>, vector<1x64xf32>
    %6 = vector.broadcast %5 : vector<1x64xf32> to vector<128x64xf32>
    %7 = arith.addf %4, %6 : vector<128x64xf32>
    %cst_6 = arith.constant 0.000000e+00 : f32
    %8 = vector.broadcast %cst_6 : f32 to vector<128x64xf32>
    %9 = arith.maximumf %7, %8 : vector<128x64xf32>
    %10 = arith.truncf %9 : vector<128x64xf32> to vector<128x64xbf16>
    %c0_7 = arith.constant 0 : index
    %c0_8 = arith.constant 0 : index
    %11 = vector.load %arg5[%c0_7, %c0_8] : memref<64x2xbf16, #tpu.memory_space<vmem>>, vector<64x2xbf16>
    %cst_9 = arith.constant dense<0.000000e+00> : vector<128x2xf32>
    %12 = tpu.matmul %10, %11, %cst_9 {dimension_numbers = #tpu.dot_dimension_numbers<[1], [0], [0], [1], [0, 0, 1, 1], [], []>} : vector<128x64xbf16>, vector<64x2xbf16>, vector<128x2xf32> -> vector<128x2xf32>
    %c0_10 = arith.constant 0 : index
    %c0_11 = arith.constant 0 : index
    %13 = vector.load %arg6[%c0_10, %c0_11] : memref<1x2xf32, #tpu.memory_space<vmem>>, vector<1x2xf32>
    %14 = vector.broadcast %13 : vector<1x2xf32> to vector<128x2xf32>
    %15 = arith.addf %12, %14 : vector<128x2xf32>
    %16 = vector.shape_cast %15 : vector<128x2xf32> to vector<16x8x2xf32>
    %c0_12 = arith.constant 0 : index
    %c0_13 = arith.constant 0 : index
    %c0_14 = arith.constant 0 : index
    %17 = vector.load %arg2[%c0_12, %c0_13, %c0_14] : memref<16x8x1xf32, #tpu.memory_space<vmem>>, vector<16x8x1xf32>
    %18 = vector.broadcast %17 : vector<16x8x1xf32> to vector<16x8x2xf32>
    %19 = arith.addf %16, %18 : vector<16x8x2xf32>
    %cst_15 = arith.constant dense<0xFF800000> : vector<16x2xf32>
    %20 = vector.multi_reduction <maximumf>, %19, %cst_15 [1] : vector<16x8x2xf32> to vector<16x2xf32>
    %21 = vector.shape_cast %20 : vector<16x2xf32> to vector<16x1x2xf32>
    %22 = vector.broadcast %21 : vector<16x1x2xf32> to vector<16x8x2xf32>
    %23 = arith.subf %19, %22 : vector<16x8x2xf32>
    %24 = math.exp %23 : vector<16x8x2xf32>
    %cst_16 = arith.constant dense<0.000000e+00> : vector<16x2xf32>
    %25 = vector.multi_reduction <add>, %24, %cst_16 [1] : vector<16x8x2xf32> to vector<16x2xf32>
    %26 = vector.shape_cast %25 : vector<16x2xf32> to vector<16x1x2xf32>
    %27 = vector.broadcast %26 : vector<16x1x2xf32> to vector<16x8x2xf32>
    %28 = arith.divf %24, %27 : vector<16x8x2xf32>
    %29 = vector.extract_strided_slice %28 {offsets = [0, 0, 0], sizes = [16, 8, 1], strides = [1, 1, 1]} : vector<16x8x2xf32> to vector<16x8x1xf32>
    %30 = vector.broadcast %29 : vector<16x8x1xf32> to vector<16x8x32xf32>
    %31 = arith.mulf %30, %0 : vector<16x8x32xf32>
    %cst_17 = arith.constant dense<0.000000e+00> : vector<16x32xf32>
    %32 = vector.multi_reduction <add>, %31, %cst_17 [1] : vector<16x8x32xf32> to vector<16x32xf32>
    %33 = vector.shape_cast %32 : vector<16x32xf32> to vector<16x1x32xf32>
    %34 = vector.shape_cast %33 : vector<16x1x32xf32> to vector<16x32xf32>
    %35 = vector.extract_strided_slice %28 {offsets = [0, 0, 1], sizes = [16, 8, 1], strides = [1, 1, 1]} : vector<16x8x2xf32> to vector<16x8x1xf32>
    %36 = vector.broadcast %35 : vector<16x8x1xf32> to vector<16x8x32xf32>
    %37 = arith.mulf %36, %0 : vector<16x8x32xf32>
    %cst_18 = arith.constant dense<0.000000e+00> : vector<16x32xf32>
    %38 = vector.multi_reduction <add>, %37, %cst_18 [1] : vector<16x8x32xf32> to vector<16x32xf32>
    %39 = vector.shape_cast %38 : vector<16x32xf32> to vector<16x1x32xf32>
    %40 = vector.shape_cast %39 : vector<16x1x32xf32> to vector<16x32xf32>
    %41 = tpu.concatenate %34, %40 in 1 : vector<16x32xf32>, vector<16x32xf32> -> vector<16x64xf32>
    %42 = arith.truncf %41 : vector<16x64xf32> to vector<16x64xbf16>
    %c0_19 = arith.constant 0 : index
    %c0_20 = arith.constant 0 : index
    %43 = vector.load %arg7[%c0_19, %c0_20] : memref<64x64xbf16, #tpu.memory_space<vmem>>, vector<64x64xbf16>
    %cst_21 = arith.constant dense<0.000000e+00> : vector<16x64xf32>
    %44 = tpu.matmul %42, %43, %cst_21 {dimension_numbers = #tpu.dot_dimension_numbers<[1], [0], [0], [1], [0, 0, 1, 1], [], []>} : vector<16x64xbf16>, vector<64x64xbf16>, vector<16x64xf32> -> vector<16x64xf32>
    %c0_22 = arith.constant 0 : index
    %c0_23 = arith.constant 0 : index
    %45 = vector.load %arg8[%c0_22, %c0_23] : memref<1x64xf32, #tpu.memory_space<vmem>>, vector<1x64xf32>
    %46 = vector.broadcast %45 : vector<1x64xf32> to vector<16x64xf32>
    %47 = arith.addf %44, %46 : vector<16x64xf32>
    %c0_24 = arith.constant 0 : index
    %c0_25 = arith.constant 0 : index
    %48 = vector.load %arg9[%c0_24, %c0_25] : memref<16x64xf32, #tpu.memory_space<vmem>>, vector<16x64xf32>
    tpu.vector_store %arg9[%c0_24, %c0_25], %47 {strides = array<i32>} : memref<16x64xf32, #tpu.memory_space<vmem>>, vector<16x64xf32>,
    return
  }
  func.func @transform_0(%arg0: i32) -> (i32, i32, i32) {
    %c0_i32 = arith.constant 0 : i32
    %c0_i32_0 = arith.constant 0 : i32
    %c0_i32_1 = arith.constant 0 : i32
    return %arg0, %c0_i32, %c0_i32_0 : i32, i32, i32
  }
  func.func @transform_1(%arg0: i32) -> (i32, i32, i32) {
    %c0_i32 = arith.constant 0 : i32
    %c0_i32_0 = arith.constant 0 : i32
    %c0_i32_1 = arith.constant 0 : i32
    return %arg0, %c0_i32, %c0_i32_0 : i32, i32, i32
  }
  func.func @transform_2(%arg0: i32) -> (i32, i32) {
    %c0_i32 = arith.constant 0 : i32
    %c0_i32_0 = arith.constant 0 : i32
    %c0_i32_1 = arith.constant 0 : i32
    return %c0_i32, %c0_i32_0 : i32, i32
  }
  func.func @transform_3(%arg0: i32) -> (i32, i32) {
    %c0_i32 = arith.constant 0 : i32
    %c0_i32_0 = arith.constant 0 : i32
    %c0_i32_1 = arith.constant 0 : i32
    return %c0_i32, %c0_i32_0 : i32, i32
  }
  func.func @transform_4(%arg0: i32) -> (i32, i32) {
    %c0_i32 = arith.constant 0 : i32
    %c0_i32_0 = arith.constant 0 : i32
    %c0_i32_1 = arith.constant 0 : i32
    return %c0_i32, %c0_i32_0 : i32, i32
  }
  func.func @transform_5(%arg0: i32) -> (i32, i32) {
    %c0_i32 = arith.constant 0 : i32
    %c0_i32_0 = arith.constant 0 : i32
    %c0_i32_1 = arith.constant 0 : i32
    return %c0_i32, %c0_i32_0 : i32, i32
  }
  func.func @transform_6(%arg0: i32) -> (i32, i32) {
    %c0_i32 = arith.constant 0 : i32
    %c0_i32_0 = arith.constant 0 : i32
    %c0_i32_1 = arith.constant 0 : i32
    return %c0_i32, %c0_i32_0 : i32, i32
  }
  func.func @transform_7(%arg0: i32) -> (i32, i32) {
    %c0_i32 = arith.constant 0 : i32
    %c0_i32_0 = arith.constant 0 : i32
    %c0_i32_1 = arith.constant 0 : i32
    return %c0_i32, %c0_i32_0 : i32, i32
  }
  func.func @transform_8(%arg0: i32) -> (i32, i32) {
    %c0_i32 = arith.constant 0 : i32
    %c0_i32_0 = arith.constant 0 : i32
    return %arg0, %c0_i32 : i32, i32
  }
}

</mosaic_0001>

<bundles_post_ra>
// kernel: tpu_custom_call.1
= control target key start
LH: loop header
LB: loop body
LE: loop exit
PB: predicated region body
PF: predicated region fallthrough
CT: control target
= control target key end

     0   :  { %13 = vsyncpa [#allocation3], 0  ;;  %s2466_s0 = inlined_call_operand.vmem [shape: f32[16,8,32], index: 0, kind: input, shape index: {}]   ;;  %s2467_s1 = inlined_call_operand.vmem [shape: f32[16,8,1], index: 1, kind: input, shape index: {}]   ;;  %s2468_s2 = inlined_call_operand.hbm [shape: bf16[32,64], index: 2, kind: input, shape index: {}]   ;;  %s2469_s3 = inlined_call_operand.vmem [shape: f32[1,64], index: 3, kind: input, shape index: {}]   ;;  %s2470_s4 = inlined_call_operand.vmem [shape: bf16[64,2], index: 4, kind: input, shape index: {}]   ;;  %s2471_s5 = inlined_call_operand.vmem [shape: f32[1,2], index: 5, kind: input, shape index: {}]   ;;  %s2472_s6 = inlined_call_operand.vmem [shape: bf16[64,64], index: 6, kind: input, shape index: {}]   ;;  %s2473_s7 = inlined_call_operand.vmem [shape: f32[1,64], index: 7, kind: input, shape index: {}]   ;;  %s2474_s8 = inlined_call_operand.hbm [shape: f32[16,64], index: 8, kind: output, shape index: {}]  }
   0x1   :  { %14 = vsyncpa [#allocation4], 0  ;;  %s23_s29 = sshll.u32 %s2468_s2, 4  ;;  %s1708_s30 = smov [#allocation2]   ;;  %s24_s29 = int_to_ptr.hbm [resolvable:$true] %s23_s29 }
   0x2   :  { %s25_s9 = sshll.u32 %s1708_s30, 4  ;;  %s1709_s10 = smov 64   ;;  %s26_s9 = int_to_ptr.vmem [resolvable:$true] %s25_s9 }
   0x3   :  { %s1710_s11 = smov 4  }
   0x4   :  { %31 = dma.hbm_to_vmem [thread:$0]  %s24_s29, 256, %s26_s9, [#allocation3], %s1709_s10, %s1709_s10, %s1710_s11  }
   0x5   :  { %1704 = dma.done.wait [#allocation3], 256  }
   0x6   :  { %1705 = vsyncadd [#allocation3], 4294967040  ;;  %v1534_v0 = vld [vmem:[#allocation2 + $0x8] sm:$0xff]  ;;  %v1533_v1 = vld [vmem:[#allocation2] sm:$0xff]  ;;  %vm91_vm0 = vcmask 261120   ;;  %v1711_v30 = vmov 0  }
   0x7   :  { %122 = vmatpush.bf16.msra.mxu0 %v1534_v0  ;;  %v47_v2 = vld [vmem:[%s2466_s0] sm:$0xff]  ;;  %v48_v3 = vld [vmem:[%s2466_s0 + $0x8] sm:$0xff]  ;;  %1543 = vmatpush.bf16.msra.mxu2 %v1534_v0  ;;  %v49_v5 = vld [vmem:[%s2466_s0 + $0x10] sm:$0xff]  ;;  %vm225_vm1 = vcmask 523264   ;;  %vm411_vm2 = vcmask 15360   ;;  %s1714_s26 = smov [#allocation5]  }
   0x8   :  { %v63_v4 = vpack.c.bf16 %v48_v3, %v47_v2  ;;  %v50_v6 = vld [vmem:[%s2466_s0 + $0x18] sm:$0xff]  ;;  %v51_v8 = vld [vmem:[%s2466_s0 + $0x20] sm:$0xff]  ;;  %v52_v9 = vld [vmem:[%s2466_s0 + $0x28] sm:$0xff]  ;;  %1558 = vset.pattern.permute.xlu0 %v1711_v30  ;;  %1559 = vset.pattern.permute.xlu1 %v1711_v30  ;;  %s1461_s27 = sshll.u32 %s1714_s26, 4  ;;  %s1463_s30 = sshll.u32 %s2474_s8, 4  ;;  %s1462_s27 = int_to_ptr.vmem [resolvable:$true] %s1461_s27  ;;  %s1464_s30 = int_to_ptr.hbm [resolvable:$true] %s1463_s30 }
   0x9   :  { %v64_v7 = vpack.c.bf16 %v50_v6, %v49_v5  ;;  %v65_v10 = vpack.c.bf16 %v52_v9, %v51_v8  ;;  %v57_v11 = vld [vmem:[%s2466_s0 + $0x50] sm:$0xff]  ;;  %v58_v12 = vld [vmem:[%s2466_s0 + $0x58] sm:$0xff]  ;;  %v59_v16 = vld [vmem:[%s2466_s0 + $0x60] sm:$0xff]  ;;  %1560 = vset.pattern.permute.xlu2 %v1711_v30  ;;  %s1715_s9 = smov 128  }
   0xa   :  { %v68_v13 = vpack.c.bf16 %v58_v12, %v57_v11  ;;  %v53_v14 = vld [vmem:[%s2466_s0 + $0x30] sm:$0xff]  ;;  %v54_v15 = vld [vmem:[%s2466_s0 + $0x38] sm:$0xff]  ;;  %v60_v17 = vld [vmem:[%s2466_s0 + $0x68] sm:$0xff] }
   0xb   :  { %123 = vmatpush.bf16.msra.mxu0 %v1533_v1  ;;  %1544 = vmatpush.bf16.msra.mxu2 %v1533_v1  ;;  %v66_v18 = vpack.c.bf16 %v54_v15, %v53_v14  ;;  %v69_v19 = vpack.c.bf16 %v60_v17, %v59_v16  ;;  %v55_v20 = vld [vmem:[%s2466_s0 + $0x40] sm:$0xff]  ;;  %v56_v21 = vld [vmem:[%s2466_s0 + $0x48] sm:$0xff]  ;;  %v61_v22 = vld [vmem:[%s2466_s0 + $0x70] sm:$0xff] }
   0xc   :  { %v62_v23 = vld [vmem:[%s2466_s0 + $0x78] sm:$0xff]  ;;  %v67_v24 = vpack.c.bf16 %v56_v21, %v55_v20  ;;  %v1537_v27 = vld [vmem:[%s2470_s4 + $0x10] sm:$0xff]  ;;  %v1536_v28 = vld [vmem:[%s2470_s4 + $0x8] sm:$0xff] }
   0xd   :  { %v70_v25 = vpack.c.bf16 %v62_v23, %v61_v22  ;;  %v1538_v26 = vld [vmem:[%s2470_s4 + $0x18] sm:$0xff]  ;;  %v1535_v29 = vld [vmem:[%s2470_s4] sm:$0xff]  ;;  %v300_v34 = vld [vmem:[%s2467_s1 + $0x8] sm:$0xff]  ;;  %s1716_s4 = smov 8  }
   0xe   :  { %1484 = vmatmul.msk.bf16.vlgmr.msra.gmra.mxu0 %vm91_vm0, %v63_v4  ;;  %1489 = vmatmul.msk.bf16.vlgmr.msra.gmra.mxu2 %vm91_vm0, %v68_v13  ;;  %v299_v31 = vld [vmem:[%s2467_s1] sm:$0xff]  ;;  %v308_v43 = vld [vmem:[%s2467_s1 + $0x48] sm:$0xff]  ;;  %v302_v44 = vld [vmem:[%s2467_s1 + $0x18] sm:$0xff] }
   0xf   :  { %254 = vmatpush.bf16.msra.mxu1 %v1538_v26  ;;  %1545 = vmatpush.bf16.msra.mxu3 %v1538_v26  ;;  %v1842_v33 = vld [vmem:[%s2469_s3] ss:$0 sm:$0xff]  ;;  %v310_v50 = vld [vmem:[%s2467_s1 + $0x58] sm:$0xff]  ;;  %v304_v53 = vld [vmem:[%s2467_s1 + $0x28] sm:$0xff] }
  0x10   :  { %317 = vperm.xlu0 %1558, %v299_v31   ;;  %v307_v40 = vld [vmem:[%s2467_s1 + $0x40] sm:$0xff]  ;;  %v301_v54 = vld [vmem:[%s2467_s1 + $0x10] sm:$0xff]  ;;  %v312_v9 = vld [vmem:[%s2467_s1 + $0x68] sm:$0xff] }
  0x11   :  { %357 = vperm.xlu1 %1559, %v307_v40   ;;  %v311_v55 = vld [vmem:[%s2467_s1 + $0x60] sm:$0xff]  ;;  %327 = vperm.xlu2 %1560, %v301_v54   ;;  %v309_v61 = vld [vmem:[%s2467_s1 + $0x50] sm:$0xff]  ;;  %v306_v13 = vld [vmem:[%s2467_s1 + $0x38] sm:$0xff] }
  0x12   :  { %v305_v62 = vld [vmem:[%s2467_s1 + $0x30] sm:$0xff]  ;;  %v303_v1 = vld [vmem:[%s2467_s1 + $0x20] sm:$0xff] }
  0x13   :  { %255 = vmatpush.bf16.msra.mxu1 %v1537_v27  ;;  %1546 = vmatpush.bf16.msra.mxu3 %v1537_v27  ;;  %v313_v8 = vld [vmem:[%s2467_s1 + $0x70] sm:$0xff] }
  0x17   :  { %256 = vmatpush.bf16.msra.mxu1 %v1536_v28  ;;  %1547 = vmatpush.bf16.msra.mxu3 %v1536_v28 }
  0x18   :  { %322 = vperm.xlu0 %1558, %v300_v34  }
  0x19   :  { %362 = vperm.xlu1 %1559, %v308_v43   ;;  %367 = vperm.xlu2 %1560, %v309_v61  }
  0x1b   :  { %257 = vmatpush.bf16.msra.mxu1 %v1535_v29  ;;  %1548 = vmatpush.bf16.msra.mxu3 %v1535_v29 }
  0x1e   :  { %1485 = vmatmul.msk.bf16.gmra.mxu0 %vm91_vm0, %v64_v7  ;;  %1490 = vmatmul.msk.bf16.gmra.mxu2 %vm91_vm0, %v69_v19 }
  0x20   :  { %332 = vperm.xlu0 %1558, %v302_v44  }
  0x21   :  { %372 = vperm.xlu1 %1559, %v310_v50   ;;  %337 = vperm.xlu2 %1560, %v303_v1  }
  0x28   :  { %377 = vperm.xlu0 %1558, %v311_v55  }
  0x29   :  { %342 = vperm.xlu1 %1559, %v304_v53   ;;  %382 = vperm.xlu2 %1560, %v312_v9  }
  0x2e   :  { %1486 = vmatmul.msk.bf16.gmra.mxu0 %vm91_vm0, %v65_v10  ;;  %1491 = vmatmul.msk.bf16.gmra.mxu2 %vm91_vm0, %v70_v25  ;;  %v314_v10 = vld [vmem:[%s2467_s1 + $0x78] sm:$0xff] }
  0x30   :  { %347 = vperm.xlu0 %1558, %v305_v62  }
  0x31   :  { %387 = vperm.xlu1 %1559, %v313_v8   ;;  %352 = vperm.xlu2 %1560, %v306_v13  }
  0x38   :  { %392 = vperm.xlu0 %1558, %v314_v10  }
  0x3e   :  { %1487 = vmatmul.msk.bf16.gmra.mxu0 %vm91_vm0, %v66_v18 }
  0x4e   :  { %1488 = vmatmul.msk.bf16.gmra.mxu0 %vm91_vm0, %v67_v24 }
  0x82   :  { %v318_v43 = vpop.permute.xlu0 %317 }
  0x83   :  { %v1921_v53 = vpop.permute.xlu1 %357 }
  0x8a   :  { %v323_v50 = vpop.permute.xlu0 %322 }
  0x8b   :  { %v125_v32 = vpop.f32.mrf.mxu0 }
  0x8c   :  { %v126_v35 = vadd.f32 %v1842_v33, %v125_v32 }
  0x8e   :  { %v165_v38 = vmax.f32 %v126_v35, 0.0 }
  0x91   :  { %v150_v12 = vpop.f32.mrf.mxu2 }
  0x92   :  { %v151_v22 = vadd.f32 %v1842_v33, %v150_v12  ;;  %v333_v13 = vpop.permute.xlu0 %332 }
  0x93   :  { %v127_v36 = vpop.f32.mrf.mxu0 }
  0x94   :  { %v128_v37 = vadd.f32 %v1842_v33, %v127_v36  ;;  %v175_v24 = vmax.f32 %v151_v22, 0.0 }
  0x96   :  { %v166_v39 = vmax.f32 %v128_v37, 0.0 }
  0x98   :  { %v181_v41 = vpack.c.bf16 %v166_v39, %v165_v38 }
  0x99   :  { %v152_v17 = vpop.f32.mrf.mxu2 }
  0x9a   :  { %1508 = vmatmul.msk.bf16.vlgmr.msra.gmra.mxu1 %vm225_vm1, %v181_v41  ;;  %v153_v23 = vadd.f32 %v1842_v33, %v152_v17 }
  0x9b   :  { %v130_v42 = vpop.f32.mrf.mxu0 }
  0x9c   :  { %v131_v45 = vadd.f32 %v1842_v33, %v130_v42  ;;  %v176_v25 = vmax.f32 %v153_v23, 0.0  ;;  %v1916_v42 = vld [vmem:[%s2471_s5] ss:$0 sm:$0xff]  ;;  %v1712_v23 = vmov 1  }
  0x9d   :  { %1561 = vset.pattern.permute.xlu1 %v1712_v23  ;;  %1562 = vset.pattern.permute.xlu2 %v1712_v23 }
  0x9e   :  { %v167_v48 = vmax.f32 %v131_v45, 0.0  ;;  %v186_v26 = vpack.c.bf16 %v176_v25, %v175_v24 }
  0xa1   :  { %v155_v21 = vpop.f32.mrf.mxu2 }
  0xa2   :  { %v156_v28 = vadd.f32 %v1842_v33, %v155_v21 }
  0xa3   :  { %v132_v46 = vpop.f32.mrf.mxu0 }
  0xa4   :  { %v133_v47 = vadd.f32 %v1842_v33, %v132_v46  ;;  %v177_v32 = vmax.f32 %v156_v28, 0.0 }
  0xa6   :  { %v168_v49 = vmax.f32 %v133_v47, 0.0 }
  0xa8   :  { %v182_v51 = vpack.c.bf16 %v168_v49, %v167_v48 }
  0xa9   :  { %v157_v27 = vpop.f32.mrf.mxu2 }
  0xaa   :  { %1509 = vmatmul.msk.bf16.gmra.mxu1 %vm225_vm1, %v182_v51  ;;  %v158_v29 = vadd.f32 %v1842_v33, %v157_v27 }
  0xab   :  { %v135_v52 = vpop.f32.mrf.mxu0 }
  0xac   :  { %v136_v56 = vadd.f32 %v1842_v33, %v135_v52  ;;  %v178_v34 = vmax.f32 %v158_v29, 0.0 }
  0xae   :  { %v169_v59 = vmax.f32 %v136_v56, 0.0  ;;  %v187_v35 = vpack.c.bf16 %v178_v34, %v177_v32  ;;  %v328_v56 = vpop.permute.xlu2 %327 }
  0xb1   :  { %v160_v31 = vpop.f32.mrf.mxu2 }
  0xb2   :  { %v161_v37 = vadd.f32 %v1842_v33, %v160_v31 }
  0xb3   :  { %v137_v57 = vpop.f32.mrf.mxu0 }
  0xb4   :  { %v138_v58 = vadd.f32 %v1842_v33, %v137_v57  ;;  %v179_v39 = vmax.f32 %v161_v37, 0.0 }
  0xb6   :  { %v170_v60 = vmax.f32 %v138_v58, 0.0  ;;  %v1928_v9 = vpop.permute.xlu2 %367 }
  0xb8   :  { %v183_v63 = vpack.c.bf16 %v170_v60, %v169_v59 }
  0xb9   :  { %v162_v36 = vpop.f32.mrf.mxu2 }
  0xba   :  { %1510 = vmatmul.msk.bf16.gmra.mxu1 %vm225_vm1, %v183_v63  ;;  %v163_v38 = vadd.f32 %v1842_v33, %v162_v36 }
  0xbb   :  { %v140_v0 = vpop.f32.mrf.mxu0 }
  0xbc   :  { %v141_v2 = vadd.f32 %v1842_v33, %v140_v0  ;;  %v180_v40 = vmax.f32 %v163_v38, 0.0 }
  0xbe   :  { %v171_v5 = vmax.f32 %v141_v2, 0.0  ;;  %v188_v41 = vpack.c.bf16 %v180_v40, %v179_v39  ;;  %v338_v34 = vpop.permute.xlu2 %337 }
  0xc3   :  { %v142_v3 = vpop.f32.mrf.mxu0 }
  0xc4   :  { %v143_v4 = vadd.f32 %v1842_v33, %v142_v3 }
  0xc6   :  { %v172_v6 = vmax.f32 %v143_v4, 0.0 }
  0xc8   :  { %v184_v7 = vpack.c.bf16 %v172_v6, %v171_v5  ;;  %v1925_v5 = vpop.permute.xlu1 %362 }
  0xca   :  { %1511 = vmatmul.msk.bf16.gmra.mxu1 %vm225_vm1, %v184_v7 }
  0xcb   :  { %v145_v11 = vpop.f32.mrf.mxu0 }
  0xcc   :  { %v146_v14 = vadd.f32 %v1842_v33, %v145_v11 }
  0xce   :  { %v173_v18 = vmax.f32 %v146_v14, 0.0 }
  0xd0   :  { %v1938_v27 = vpop.permute.xlu1 %372 }
  0xd3   :  { %v147_v15 = vpop.f32.mrf.mxu0 }
  0xd4   :  { %v148_v16 = vadd.f32 %v1842_v33, %v147_v15 }
  0xd6   :  { %v174_v19 = vmax.f32 %v148_v16, 0.0 }
  0xd8   :  { %v185_v20 = vpack.c.bf16 %v174_v19, %v173_v18 }
  0xda   :  { %1512 = vmatmul.msk.bf16.vlgmr.msra.gmra.mxu3 %vm225_vm1, %v185_v20 }
  0xea   :  { %1513 = vmatmul.msk.bf16.gmra.mxu3 %vm225_vm1, %v186_v26 }
  0xfa   :  { %1514 = vmatmul.msk.bf16.gmra.mxu3 %vm225_vm1, %v187_v35 }
 0x10a   :  { %1515 = vmatmul.msk.bf16.gmra.mxu3 %vm225_vm1, %v188_v41 }
 0x117   :  { %v259_v44 = vpop.f32.mrf.mxu1 }
 0x118   :  { %v260_v45 = vadd.f32 %v1916_v42, %v259_v44 }
 0x11a   :  { %v395_v46 = vadd.f32 %v318_v43, %v260_v45 }
 0x11c   :  { %v412_v47 = vsel %vm411_vm2, %v395_v46, -inf }
 0x11d   :  { %v413_v48 = vrot.slane %v412_v47, 4 }
 0x11f   :  { %v414_v33 = vmax.f32 %v412_v47, %v413_v48  ;;  %v261_v49 = vpop.f32.mrf.mxu1 }
 0x120   :  { %v262_v51 = vadd.f32 %v1916_v42, %v261_v49  ;;  %v1946_v49 = vpop.permute.xlu0 %377 }
 0x121   :  { %v415_v52 = vrot.slane %v414_v33, 2 }
 0x122   :  { %v396_v54 = vadd.f32 %v323_v50, %v262_v51 }
 0x123   :  { %v416_v55 = vmax.f32 %v414_v33, %v415_v52 }
 0x124   :  { %v419_v57 = vsel %vm411_vm2, %v396_v54, -inf }
 0x125   :  { %v417_v58 = vrot.slane %v416_v55, 1  ;;  %v420_v59 = vrot.slane %v419_v57, 4 }
 0x127   :  { %v418_v60 = vmax.f32 %v416_v55, %v417_v58  ;;  %v421_v61 = vmax.f32 %v419_v57, %v420_v59  ;;  %v264_v62 = vpop.f32.mrf.mxu1 }
 0x128   :  { %v265_v63 = vadd.f32 %v1916_v42, %v264_v62 }
 0x129   :  { %v524_v0 = vsub.f32 %v395_v46, %v418_v60  ;;  %v422_v1 = vrot.slane %v421_v61, 2 }
 0x12a   :  { %v397_v2 = vadd.f32 %v328_v56, %v265_v63  ;;  %v343_v56 = vpop.permute.xlu1 %342 }
 0x12b   :  { %v540_v3 = vmul.f32 1.442695, %v524_v0  ;;  %v423_v4 = vmax.f32 %v421_v61, %v422_v1 }
 0x12c   :  { %v426_v6 = vsel %vm411_vm2, %v397_v2, -inf }
 0x12d   :  { %1576 = vpow2.f32 %v540_v3  ;;  %v424_v7 = vrot.slane %v423_v4, 1  ;;  %v427_v8 = vrot.slane %v426_v6, 4 }
 0x12f   :  { %v425_v10 = vmax.f32 %v423_v4, %v424_v7  ;;  %v428_v11 = vmax.f32 %v426_v6, %v427_v8  ;;  %v266_v12 = vpop.f32.mrf.mxu1 }
 0x130   :  { %v267_v14 = vadd.f32 %v1916_v42, %v266_v12 }
 0x131   :  { %v525_v15 = vsub.f32 %v396_v54, %v425_v10  ;;  %v429_v16 = vrot.slane %v428_v11, 2  ;;  %v1960_v10 = vpop.permute.xlu2 %382 }
 0x132   :  { %v398_v17 = vadd.f32 %v333_v13, %v267_v14 }
 0x133   :  { %v1931_v18 = vpop.eup %1576  ;;  %v542_v19 = vmul.f32 1.442695, %v525_v15  ;;  %v430_v20 = vmax.f32 %v428_v11, %v429_v16 }
 0x134   :  { %v572_v21 = vsel %vm411_vm2, %v1931_v18, 0.0  ;;  %v433_v22 = vsel %vm411_vm2, %v398_v17, -inf }
 0x135   :  { %v573_v24 = vrot.slane %v572_v21, 4  ;;  %1578 = vpow2.f32 %v542_v19  ;;  %v431_v25 = vrot.slane %v430_v20, 1  ;;  %v434_v26 = vrot.slane %v433_v22, 4 }
 0x137   :  { %v574_v28 = vadd.f32 %v573_v24, %v572_v21  ;;  %v432_v29 = vmax.f32 %v430_v20, %v431_v25  ;;  %v435_v31 = vmax.f32 %v433_v22, %v434_v26  ;;  %v269_v32 = vpop.f32.mrf.mxu1 }
 0x138   :  { %v270_v35 = vadd.f32 %v1916_v42, %v269_v32 }
 0x139   :  { %v575_v36 = vrot.slane %v574_v28, 2  ;;  %v526_v37 = vsub.f32 %v397_v2, %v432_v29  ;;  %v436_v38 = vrot.slane %v435_v31, 2 }
 0x13a   :  { %v399_v39 = vadd.f32 %v338_v34, %v270_v35 }
 0x13b   :  { %v1941_v40 = vpop.eup %1578  ;;  %v576_v41 = vadd.f32 %v575_v36, %v574_v28  ;;  %v544_v43 = vmul.f32 1.442695, %v526_v37  ;;  %v437_v44 = vmax.f32 %v435_v31, %v436_v38 }
 0x13c   :  { %v579_v45 = vsel %vm411_vm2, %v1941_v40, 0.0  ;;  %v440_v46 = vsel %vm411_vm2, %v399_v39, -inf }
 0x13d   :  { %v577_v47 = vrot.slane %v576_v41, 1  ;;  %v580_v48 = vrot.slane %v579_v45, 4  ;;  %1580 = vpow2.f32 %v544_v43  ;;  %v438_v33 = vrot.slane %v437_v44, 1 }
 0x13e   :  { %v441_v50 = vrot.slane %v440_v46, 4 }
 0x13f   :  { %v1948_v51 = vadd.f32 %v577_v47, %v576_v41  ;;  %v581_v52 = vadd.f32 %v580_v48, %v579_v45  ;;  %v439_v54 = vmax.f32 %v437_v44, %v438_v33  ;;  %v271_v55 = vpop.f32.mrf.mxu1 }
 0x140   :  { %v442_v57 = vmax.f32 %v440_v46, %v441_v50  ;;  %v272_v58 = vadd.f32 %v1916_v42, %v271_v55 }
 0x141   :  { %1582 = vrcp.f32 %v1948_v51  ;;  %v582_v59 = vrot.slane %v581_v52, 2  ;;  %v527_v60 = vsub.f32 %v398_v17, %v439_v54  ;;  %v348_v17 = vpop.permute.xlu0 %347  ;;  %v693_v25 = vand.u32 2147483647, %v1948_v51 }
 0x142   :  { %v443_v61 = vrot.slane %v442_v57, 2  ;;  %v1952_v62 = vadd.f32 %v343_v56, %v272_v58  ;;  %v695_v31 = vand.u32 2147483648, %v1948_v51  ;;  %vm689_vm3 = vweird.f32 %v1948_v51 }
 0x143   :  { %v1954_v63 = vpop.eup %1580  ;;  %v583_v0 = vadd.f32 %v582_v59, %v581_v52  ;;  %v546_v1 = vmul.f32 1.442695, %v527_v60  ;;  %vm1978_vm5 = vcmp.eq.f32.partialorder %v693_v25, 8.507059e+37 }
 0x144   :  { %v586_v2 = vsel %vm411_vm2, %v1954_v63, 0.0  ;;  %v444_v3 = vmax.f32 %v442_v57, %v443_v61  ;;  %v447_v4 = vsel %vm411_vm2, %v1952_v62, -inf  ;;  %v696_v48 = vor.u32 1.1754944e-38, %v695_v31  ;;  %v353_v57 = vpop.permute.xlu2 %352 }
 0x145   :  { %v584_v6 = vrot.slane %v583_v0, 1  ;;  %v587_v7 = vrot.slane %v586_v2, 4  ;;  %1584 = vpow2.f32 %v546_v1  ;;  %v448_v8 = vrot.slane %v447_v4, 4 }
 0x146   :  { %v445_v11 = vrot.slane %v444_v3, 1 }
 0x147   :  { %v1583_v12 = vpop.eup %1582  ;;  %v1962_v13 = vadd.f32 %v584_v6, %v583_v0  ;;  %v588_v14 = vadd.f32 %v587_v7, %v586_v2  ;;  %v449_v15 = vmax.f32 %v447_v4, %v448_v8  ;;  %v274_v16 = vpop.f32.mrf.mxu1 }
 0x148   :  { %v446_v19 = vmax.f32 %v444_v3, %v445_v11  ;;  %v275_v20 = vadd.f32 %v1916_v42, %v274_v16  ;;  %v685_v21 = vmul.f32 %v1583_v12, %v1948_v51  ;;  %vm690_vm4 = vweird.f32 %v1583_v12 }
 0x149   :  { %1586 = vrcp.f32 %v1962_v13  ;;  %v589_v22 = vrot.slane %v588_v14, 2  ;;  %v450_v24 = vrot.slane %v449_v15, 2  ;;  %vm691_vm6 = vmor %vm689_vm3, %vm690_vm4  ;;  %v708_v61 = vand.u32 2147483647, %v1962_v13 }
 0x14a   :  { %v528_v26 = vsub.f32 %v399_v39, %v446_v19  ;;  %v1968_v28 = vadd.f32 %v348_v17, %v275_v20  ;;  %v686_v29 = vsub.f32 1.0, %v685_v21  ;;  %v710_v6 = vand.u32 2147483648, %v1962_v13 }
 0x14b   :  { %v1971_v32 = vpop.eup %1584  ;;  %v590_v34 = vadd.f32 %v589_v22, %v588_v14  ;;  %v451_v35 = vmax.f32 %v449_v15, %v450_v24  ;;  %vm704_vm8 = vweird.f32 %v1962_v13  ;;  %vm709_vm10 = vcmp.eq.f32.partialorder %v708_v61, 8.507059e+37 }
 0x14c   :  { %v593_v36 = vsel %vm411_vm2, %v1971_v32, 0.0  ;;  %v548_v37 = vmul.f32 1.442695, %v528_v26  ;;  %v454_v38 = vsel %vm411_vm2, %v1968_v28, -inf  ;;  %v687_v39 = vmul.f32 %v1583_v12, %v686_v29 }
 0x14d   :  { %v591_v41 = vrot.slane %v590_v34, 1  ;;  %v594_v43 = vrot.slane %v593_v36, 4  ;;  %v452_v44 = vrot.slane %v451_v35, 1  ;;  %v455_v45 = vrot.slane %v454_v38, 4 }
 0x14e   :  { %1588 = vpow2.f32 %v548_v37  ;;  %v688_v46 = vadd.f32 %v1583_v12, %v687_v39  ;;  %v711_v26 = vor.u32 1.1754944e-38, %v710_v6 }
 0x14f   :  { %v1587_v33 = vpop.eup %1586  ;;  %v1982_v50 = vadd.f32 %v591_v41, %v590_v34  ;;  %v595_v52 = vadd.f32 %v594_v43, %v593_v36  ;;  %v453_v54 = vmax.f32 %v451_v35, %v452_v44  ;;  %v456_v55 = vmax.f32 %v454_v38, %v455_v45  ;;  %v276_v56 = vpop.f32.mrf.mxu1 }
 0x150   :  { %v277_v58 = vadd.f32 %v1916_v42, %v276_v56  ;;  %v692_v59 = vsel %vm691_vm6, %v1583_v12, %v688_v46  ;;  %v700_v60 = vmul.f32 %v1587_v33, %v1962_v13  ;;  %vm705_vm7 = vweird.f32 %v1587_v33 }
 0x151   :  { %1590 = vrcp.f32 %v1982_v50  ;;  %v596_v0 = vrot.slane %v595_v52, 2  ;;  %v529_v1 = vsub.f32 %v1952_v62, %v453_v54  ;;  %v457_v2 = vrot.slane %v456_v55, 2  ;;  %vm706_vm9 = vmor %vm704_vm8, %vm705_vm7 }
 0x152   :  { %v1992_v3 = vadd.f32 %v353_v57, %v277_v58  ;;  %v697_v4 = vsel %vm1978_vm5, %v696_v48, %v692_v59  ;;  %v701_v51 = vsub.f32 1.0, %v700_v60  ;;  %v723_v45 = vand.u32 2147483647, %v1982_v50 }
 0x153   :  { %v597_v7 = vadd.f32 %v596_v0, %v595_v52  ;;  %v550_v8 = vmul.f32 1.442695, %v529_v1  ;;  %v458_v11 = vmax.f32 %v456_v55, %v457_v2  ;;  %v698_v12 = vmul.f32 %v1931_v18, %v697_v4 }
 0x154   :  { %v1998_v14 = vpop.eup %1588  ;;  %v461_v15 = vsel %vm411_vm2, %v1992_v3, -inf  ;;  %v702_v62 = vmul.f32 %v1587_v33, %v701_v51  ;;  %v725_v46 = vand.u32 2147483648, %v1982_v50  ;;  %vm719_vm12 = vweird.f32 %v1982_v50 }
 0x155   :  { %v598_v16 = vrot.slane %v597_v7, 1  ;;  %v600_v17 = vsel %vm411_vm2, %v1998_v14, 0.0  ;;  %1592 = vpow2.f32 %v550_v8  ;;  %v459_v19 = vrot.slane %v458_v11, 1  ;;  %926 = vperm.xlu0 %1558, %v698_v12   ;;  %1133 = vperm.xlu1 %1561, %v698_v12  }
 0x156   :  { %v601_v20 = vrot.slane %v600_v17, 4  ;;  %v462_v21 = vrot.slane %v461_v15, 4  ;;  %v703_v22 = vadd.f32 %v1587_v33, %v702_v62  ;;  %vm724_vm14 = vcmp.eq.f32.partialorder %v723_v45, 8.507059e+37 }
 0x157   :  { %v1591_v18 = vpop.eup %1590  ;;  %v2005_v24 = vadd.f32 %v598_v16, %v597_v7  ;;  %v460_v25 = vmax.f32 %v458_v11, %v459_v19  ;;  %v726_v60 = vor.u32 1.1754944e-38, %v725_v46 }
 0x158   :  { %v602_v29 = vadd.f32 %v601_v20, %v600_v17  ;;  %v463_v31 = vmax.f32 %v461_v15, %v462_v21  ;;  %v707_v34 = vsel %vm706_vm9, %v1587_v33, %v703_v22  ;;  %v715_v35 = vmul.f32 %v1591_v18, %v1982_v50 }
 0x159   :  { %1594 = vrcp.f32 %v2005_v24  ;;  %v530_v36 = vsub.f32 %v1968_v28, %v460_v25  ;;  %v712_v37 = vsel %vm709_vm10, %v711_v26, %v707_v34  ;;  %vm720_vm11 = vweird.f32 %v1591_v18 }
 0x15a   :  { %v603_v38 = vrot.slane %v602_v29, 2  ;;  %v464_v39 = vrot.slane %v463_v31, 2  ;;  %v2011_v13 = vmul.f32 %v1941_v40, %v712_v37  ;;  %v716_v41 = vsub.f32 1.0, %v715_v35  ;;  %vm721_vm13 = vmor %vm719_vm12, %vm720_vm11 }
 0x15b   :  { %v2013_v43 = vpop.eup %1592  ;;  %v552_v44 = vmul.f32 1.442695, %v530_v36  ;;  %v738_v6 = vand.u32 2147483647, %v2005_v24  ;;  %vm734_vm3 = vweird.f32 %v2005_v24 }
 0x15c   :  { %v604_v47 = vadd.f32 %v603_v38, %v602_v29  ;;  %v607_v48 = vsel %vm411_vm2, %v2013_v43, 0.0  ;;  %v465_v28 = vmax.f32 %v463_v31, %v464_v39  ;;  %1137 = vperm.xlu2 %1562, %v2011_v13   ;;  %v717_v33 = vmul.f32 %v1591_v18, %v716_v41 }
 0x15d   :  { %v608_v52 = vrot.slane %v607_v48, 4  ;;  %1596 = vpow2.f32 %v552_v44  ;;  %v279_v40 = vpop.f32.mrf.mxu3  ;;  %1563 = vset.pattern.permute.xlu0 %v1712_v23  ;;  %vm2046_vm4 = vcmp.eq.f32.partialorder %v738_v6, 8.507059e+37 }
 0x15e   :  { %v605_v54 = vrot.slane %v604_v47, 1  ;;  %v466_v55 = vrot.slane %v465_v28, 1  ;;  %v280_v56 = vadd.f32 %v1916_v42, %v279_v40  ;;  %v718_v57 = vadd.f32 %v1591_v18, %v717_v33 }
 0x15f   :  { %v1595_v58 = vpop.eup %1594  ;;  %v609_v59 = vadd.f32 %v608_v52, %v607_v48 }
 0x160   :  { %v2024_v61 = vadd.f32 %v605_v54, %v604_v47  ;;  %v467_v0 = vmax.f32 %v465_v28, %v466_v55  ;;  %v2027_v1 = vadd.f32 %v1921_v53, %v280_v56  ;;  %v722_v50 = vsel %vm721_vm13, %v1591_v18, %v718_v57 }
 0x161   :  { %v610_v2 = vrot.slane %v609_v59, 2  ;;  %v727_v4 = vsel %vm724_vm14, %v726_v60, %v722_v50  ;;  %v730_v51 = vmul.f32 %v1595_v58, %v2005_v24  ;;  %vm735_vm15 = vweird.f32 %v1595_v58 }
 0x162   :  { %1598 = vrcp.f32 %v2024_v61  ;;  %v531_v7 = vsub.f32 %v1992_v3, %v467_v0  ;;  %v468_v8 = vsel %vm411_vm2, %v2027_v1, -inf  ;;  %v2036_v11 = vmul.f32 %v1954_v63, %v727_v4  ;;  %vm736_vm5 = vmor %vm734_vm3, %vm735_vm15 }
 0x163   :  { %v2038_v12 = vpop.eup %1596  ;;  %v611_v53 = vadd.f32 %v610_v2, %v609_v59  ;;  %v469_v15 = vrot.slane %v468_v8, 4  ;;  %v731_v62 = vsub.f32 1.0, %v730_v51  ;;  %v740_v3 = vand.u32 2147483648, %v2005_v24 }
 0x164   :  { %v614_v16 = vsel %vm411_vm2, %v2038_v12, 0.0  ;;  %v554_v17 = vmul.f32 1.442695, %v531_v7  ;;  %1141 = vperm.xlu2 %1562, %v2036_v11   ;;  %v753_v38 = vand.u32 2147483647, %v2024_v61  ;;  %v755_v24 = vand.u32 2147483648, %v2024_v61 }
 0x165   :  { %v612_v19 = vrot.slane %v611_v53, 1  ;;  %v615_v20 = vrot.slane %v614_v16, 4  ;;  %v470_v21 = vmax.f32 %v468_v8, %v469_v15  ;;  %v281_v22 = vpop.f32.mrf.mxu3  ;;  %v732_v63 = vmul.f32 %v1595_v58, %v731_v62 }
 0x166   :  { %1600 = vpow2.f32 %v554_v17  ;;  %v282_v18 = vadd.f32 %v1916_v42, %v281_v22  ;;  %v741_v37 = vor.u32 1.1754944e-38, %v740_v3  ;;  %vm749_vm6 = vweird.f32 %v2024_v61 }
 0x167   :  { %v2050_v26 = vadd.f32 %v612_v19, %v611_v53  ;;  %v616_v29 = vadd.f32 %v615_v20, %v614_v16  ;;  %v471_v31 = vrot.slane %v470_v21, 2  ;;  %v733_v34 = vadd.f32 %v1595_v58, %v732_v63 }
 0x168   :  { %v1599_v35 = vpop.eup %1598  ;;  %v2053_v36 = vadd.f32 %v1925_v5, %v282_v18  ;;  %vm2070_vm7 = vcmp.eq.f32.partialorder %v753_v38, 8.507059e+37  ;;  %v756_v55 = vor.u32 1.1754944e-38, %v755_v24 }
 0x169   :  { %1602 = vrcp.f32 %v2050_v26  ;;  %v617_v39 = vrot.slane %v616_v29, 2  ;;  %v472_v41 = vmax.f32 %v470_v21, %v471_v31  ;;  %v737_v44 = vsel %vm736_vm5, %v1595_v58, %v733_v34 }
 0x16a   :  { %v475_v45 = vsel %vm411_vm2, %v2053_v36, -inf  ;;  %v742_v46 = vsel %vm2046_vm4, %v741_v37, %v737_v44  ;;  %v745_v5 = vmul.f32 %v1599_v35, %v2024_v61  ;;  %vm750_vm8 = vweird.f32 %v1599_v35 }
 0x16b   :  { %v618_v47 = vadd.f32 %v617_v39, %v616_v29  ;;  %v473_v48 = vrot.slane %v472_v41, 1  ;;  %v476_v28 = vrot.slane %v475_v45, 4  ;;  %v2065_v33 = vmul.f32 %v1971_v32, %v742_v46  ;;  %vm751_vm9 = vmor %vm749_vm6, %vm750_vm8 }
 0x16c   :  { %v2067_v52 = vpop.eup %1600  ;;  %v746_v40 = vsub.f32 1.0, %v745_v5  ;;  %v768_v7 = vand.u32 2147483647, %v2050_v26  ;;  %v770_v3 = vand.u32 2147483648, %v2050_v26  ;;  %vm764_vm11 = vweird.f32 %v2050_v26 }
 0x16d   :  { %v619_v56 = vrot.slane %v618_v47, 1  ;;  %v621_v57 = vsel %vm411_vm2, %v2067_v52, 0.0  ;;  %v474_v58 = vmax.f32 %v472_v41, %v473_v48  ;;  %v477_v59 = vmax.f32 %v475_v45, %v476_v28  ;;  %1145 = vperm.xlu2 %1562, %v2065_v33   ;;  %v284_v32 = vpop.f32.mrf.mxu3 }
 0x16e   :  { %v622_v60 = vrot.slane %v621_v57, 4  ;;  %v285_v0 = vadd.f32 %v1916_v42, %v284_v32  ;;  %v747_v50 = vmul.f32 %v1599_v35, %v746_v40  ;;  %vm769_vm13 = vcmp.eq.f32.partialorder %v768_v7, 8.507059e+37 }
 0x16f   :  { %v1603_v2 = vpop.eup %1602  ;;  %v2078_v4 = vadd.f32 %v619_v56, %v618_v47  ;;  %v532_v51 = vsub.f32 %v2027_v1, %v474_v58  ;;  %v478_v6 = vrot.slane %v477_v59, 2 }
 0x170   :  { %v623_v8 = vadd.f32 %v622_v60, %v621_v57  ;;  %v2083_v53 = vadd.f32 %v1928_v9, %v285_v0  ;;  %v748_v15 = vadd.f32 %v1599_v35, %v747_v50  ;;  %v760_v62 = vmul.f32 %v1603_v2, %v2050_v26 }
 0x171   :  { %1604 = vrcp.f32 %v2078_v4  ;;  %v556_v16 = vmul.f32 1.442695, %v532_v51  ;;  %v479_v17 = vmax.f32 %v477_v59, %v478_v6  ;;  %vm765_vm10 = vweird.f32 %v1603_v2 }
 0x172   :  { %v624_v1 = vrot.slane %v623_v8, 2  ;;  %v482_v19 = vsel %vm411_vm2, %v2083_v53, -inf  ;;  %v752_v20 = vsel %vm751_vm9, %v1599_v35, %v748_v15  ;;  %v761_v21 = vsub.f32 1.0, %v760_v62  ;;  %vm766_vm12 = vmor %vm764_vm11, %vm765_vm10 }
 0x173   :  { %1606 = vpow2.f32 %v556_v16  ;;  %v480_v9 = vrot.slane %v479_v17, 1  ;;  %v483_v22 = vrot.slane %v482_v19, 4  ;;  %v757_v63 = vsel %vm2070_vm7, %v756_v55, %v752_v20  ;;  %v388_v16 = vpop.permute.xlu1 %387 }
 0x174   :  { %v625_v18 = vadd.f32 %v624_v1, %v623_v8  ;;  %v2095_v25 = vmul.f32 %v1998_v14, %v757_v63  ;;  %v762_v61 = vmul.f32 %v1603_v2, %v761_v21  ;;  %v771_v14 = vor.u32 1.1754944e-38, %v770_v3 }
 0x175   :  { %v481_v29 = vmax.f32 %v479_v17, %v480_v9  ;;  %v484_v31 = vmax.f32 %v482_v19, %v483_v22  ;;  %v286_v34 = vpop.f32.mrf.mxu3  ;;  %v783_v58 = vand.u32 2147483647, %v2078_v4  ;;  %v785_v59 = vand.u32 2147483648, %v2078_v4 }
 0x176   :  { %v626_v37 = vrot.slane %v625_v18, 1  ;;  %1149 = vperm.xlu1 %1561, %v2095_v25   ;;  %v287_v35 = vadd.f32 %v1916_v42, %v286_v34  ;;  %v763_v38 = vadd.f32 %v1603_v2, %v762_v61  ;;  %vm779_vm15 = vweird.f32 %v2078_v4 }
 0x177   :  { %v1605_v24 = vpop.eup %1604  ;;  %v533_v39 = vsub.f32 %v2053_v36, %v481_v29  ;;  %v485_v41 = vrot.slane %v484_v31, 2  ;;  %vm2126_vm3 = vcmp.eq.f32.partialorder %v783_v58, 8.507059e+37  ;;  %v786_v17 = vor.u32 1.1754944e-38, %v785_v59 }
 0x178   :  { %v2101_v44 = vadd.f32 %v626_v37, %v625_v18  ;;  %v2104_v45 = vadd.f32 %v1938_v27, %v287_v35  ;;  %v767_v46 = vsel %vm766_vm12, %v1603_v2, %v763_v38  ;;  %v775_v5 = vmul.f32 %v1605_v24, %v2078_v4 }
 0x179   :  { %v2107_v47 = vpop.eup %1606  ;;  %v558_v48 = vmul.f32 1.442695, %v533_v39  ;;  %v486_v28 = vmax.f32 %v484_v31, %v485_v41  ;;  %v772_v26 = vsel %vm769_vm13, %v771_v14, %v767_v46  ;;  %vm780_vm14 = vweird.f32 %v1605_v24 }
 0x17a   :  { %1608 = vrcp.f32 %v2101_v44  ;;  %v628_v36 = vsel %vm411_vm2, %v2107_v47, 0.0  ;;  %v489_v40 = vsel %vm411_vm2, %v2104_v45, -inf  ;;  %v2115_v54 = vmul.f32 %v2013_v43, %v772_v26  ;;  %vm781_vm4 = vmor %vm779_vm15, %vm780_vm14 }
 0x17b   :  { %v629_v27 = vrot.slane %v628_v36, 4  ;;  %1610 = vpow2.f32 %v558_v48  ;;  %v487_v55 = vrot.slane %v486_v28, 1  ;;  %v490_v56 = vrot.slane %v489_v40, 4 }
 0x17c   :  { %1153 = vperm.xlu0 %1563, %v2115_v54   ;;  %v776_v57 = vsub.f32 1.0, %v775_v5  ;;  %v798_v9 = vand.u32 2147483647, %v2101_v44  ;;  %v800_v34 = vand.u32 2147483648, %v2101_v44  ;;  %vm794_vm6 = vweird.f32 %v2101_v44 }
 0x17d   :  { %v630_v32 = vadd.f32 %v629_v27, %v628_v36  ;;  %v488_v60 = vmax.f32 %v486_v28, %v487_v55  ;;  %v491_v0 = vmax.f32 %v489_v40, %v490_v56  ;;  %v289_v50 = vpop.f32.mrf.mxu3 }
 0x17e   :  { %v290_v2 = vadd.f32 %v1916_v42, %v289_v50  ;;  %v777_v51 = vmul.f32 %v1605_v24, %v776_v57  ;;  %vm799_vm8 = vcmp.eq.f32.partialorder %v798_v9, 8.507059e+37  ;;  %v801_v55 = vor.u32 1.1754944e-38, %v800_v34 }
 0x17f   :  { %v631_v43 = vrot.slane %v630_v32, 2  ;;  %v534_v6 = vsub.f32 %v2083_v53, %v488_v60  ;;  %v492_v7 = vrot.slane %v491_v0, 2 }
 0x180   :  { %v1609_v8 = vpop.eup %1608  ;;  %v2124_v15 = vadd.f32 %v1946_v49, %v290_v2  ;;  %v778_v62 = vadd.f32 %v1605_v24, %v777_v51 }
 0x181   :  { %v2130_v3 = vpop.eup %1610  ;;  %v632_v1 = vadd.f32 %v631_v43, %v630_v32  ;;  %v560_v19 = vmul.f32 1.442695, %v534_v6  ;;  %v493_v20 = vmax.f32 %v491_v0, %v492_v7  ;;  %v790_v53 = vmul.f32 %v1609_v8, %v2101_v44 }
 0x182   :  { %v635_v4 = vsel %vm411_vm2, %v2130_v3, 0.0  ;;  %v496_v49 = vsel %vm411_vm2, %v2124_v15, -inf  ;;  %v782_v21 = vsel %vm781_vm4, %v1605_v24, %v778_v62  ;;  %vm795_vm5 = vweird.f32 %v1609_v8 }
 0x183   :  { %v633_v22 = vrot.slane %v632_v1, 1  ;;  %v636_v63 = vrot.slane %v635_v4, 4  ;;  %1612 = vpow2.f32 %v560_v19  ;;  %v494_v18 = vrot.slane %v493_v20, 1  ;;  %vm796_vm7 = vmor %vm794_vm6, %vm795_vm5 }
 0x184   :  { %v497_v61 = vrot.slane %v496_v49, 4  ;;  %v787_v29 = vsel %vm2126_vm3, %v786_v17, %v782_v21  ;;  %v791_v31 = vsub.f32 1.0, %v790_v53 }
 0x185   :  { %v2141_v37 = vadd.f32 %v633_v22, %v632_v1  ;;  %v637_v35 = vadd.f32 %v636_v63, %v635_v4  ;;  %v495_v38 = vmax.f32 %v493_v20, %v494_v18  ;;  %v2144_v39 = vmul.f32 %v2038_v12, %v787_v29  ;;  %v291_v24 = vpop.f32.mrf.mxu3 }
 0x186   :  { %v498_v41 = vmax.f32 %v496_v49, %v497_v61  ;;  %v292_v14 = vadd.f32 %v1916_v42, %v291_v24  ;;  %v792_v46 = vmul.f32 %v1609_v8, %v791_v31 }
 0x187   :  { %1614 = vrcp.f32 %v2141_v37  ;;  %v638_v5 = vrot.slane %v637_v35, 2  ;;  %v535_v48 = vsub.f32 %v2104_v45, %v495_v38  ;;  %1157 = vperm.xlu2 %1562, %v2144_v39   ;;  %v813_v19 = vand.u32 2147483647, %v2141_v37 }
 0x188   :  { %v499_v28 = vrot.slane %v498_v41, 2  ;;  %v2151_v26 = vadd.f32 %v1960_v10, %v292_v14  ;;  %v793_v36 = vadd.f32 %v1609_v8, %v792_v46  ;;  %v815_v4 = vand.u32 2147483648, %v2141_v37 }
 0x189   :  { %v2154_v12 = vpop.eup %1612  ;;  %v639_v40 = vadd.f32 %v638_v5, %v637_v35  ;;  %v562_v27 = vmul.f32 1.442695, %v535_v48  ;;  %vm809_vm9 = vweird.f32 %v2141_v37  ;;  %vm2181_vm11 = vcmp.eq.f32.partialorder %v813_v19, 8.507059e+37 }
 0x18a   :  { %v642_v56 = vsel %vm411_vm2, %v2154_v12, 0.0  ;;  %v500_v45 = vmax.f32 %v498_v41, %v499_v28  ;;  %v503_v57 = vsel %vm411_vm2, %v2151_v26, -inf  ;;  %v797_v58 = vsel %vm796_vm7, %v1609_v8, %v793_v36 }
 0x18b   :  { %v640_v10 = vrot.slane %v639_v40, 1  ;;  %v643_v59 = vrot.slane %v642_v56, 4  ;;  %1616 = vpow2.f32 %v562_v27  ;;  %v504_v32 = vrot.slane %v503_v57, 4 }
 0x18c   :  { %v501_v44 = vrot.slane %v500_v45, 1  ;;  %v802_v60 = vsel %vm799_vm8, %v801_v55, %v797_v58  ;;  %v816_v24 = vor.u32 1.1754944e-38, %v815_v4 }
 0x18d   :  { %v1615_v0 = vpop.eup %1614  ;;  %v2160_v50 = vadd.f32 %v640_v10, %v639_v40  ;;  %v644_v2 = vadd.f32 %v643_v59, %v642_v56  ;;  %v505_v51 = vmax.f32 %v503_v57, %v504_v32  ;;  %v2163_v43 = vmul.f32 %v2067_v52, %v802_v60  ;;  %v294_v6 = vpop.f32.mrf.mxu3 }
 0x18e   :  { %v502_v7 = vmax.f32 %v500_v45, %v501_v44  ;;  %v295_v62 = vadd.f32 %v1916_v42, %v294_v6  ;;  %v805_v8 = vmul.f32 %v1615_v0, %v2141_v37  ;;  %vm810_vm10 = vweird.f32 %v1615_v0  ;;  %v393_v56 = vpop.permute.xlu0 %392 }
 0x18f   :  { %1618 = vrcp.f32 %v2160_v50  ;;  %v645_v17 = vrot.slane %v644_v2, 2  ;;  %v506_v1 = vrot.slane %v505_v51, 2  ;;  %1161 = vperm.xlu1 %1561, %v2163_v43   ;;  %vm811_vm12 = vmor %vm809_vm9, %vm810_vm10  ;;  %v828_v55 = vand.u32 2147483647, %v2160_v50 }
 0x190   :  { %v536_v20 = vsub.f32 %v2124_v15, %v502_v7  ;;  %v2171_v53 = vadd.f32 %v388_v16, %v295_v62  ;;  %v806_v52 = vsub.f32 1.0, %v805_v8  ;;  %vm824_vm14 = vweird.f32 %v2160_v50 }
 0x191   :  { %v2174_v49 = vpop.eup %1616  ;;  %v646_v21 = vadd.f32 %v645_v17, %v644_v2  ;;  %v507_v9 = vmax.f32 %v505_v51, %v506_v1  ;;  %vm829_vm3 = vcmp.eq.f32.partialorder %v828_v55, 8.507059e+37 }
 0x192   :  { %v649_v22 = vsel %vm411_vm2, %v2174_v49, 0.0  ;;  %v564_v63 = vmul.f32 1.442695, %v536_v20  ;;  %v510_v18 = vsel %vm411_vm2, %v2171_v53, -inf  ;;  %v807_v15 = vmul.f32 %v1615_v0, %v806_v52 }
 0x193   :  { %v647_v61 = vrot.slane %v646_v21, 1  ;;  %v650_v29 = vrot.slane %v649_v22, 4  ;;  %v508_v31 = vrot.slane %v507_v9, 1  ;;  %v511_v34 = vrot.slane %v510_v18, 4 }
 0x194   :  { %1620 = vpow2.f32 %v564_v63  ;;  %v808_v35 = vadd.f32 %v1615_v0, %v807_v15 }
 0x195   :  { %v1619_v41 = vpop.eup %1618  ;;  %v2185_v14 = vadd.f32 %v647_v61, %v646_v21  ;;  %v651_v46 = vadd.f32 %v650_v29, %v649_v22  ;;  %v509_v5 = vmax.f32 %v507_v9, %v508_v31  ;;  %v512_v48 = vmax.f32 %v510_v18, %v511_v34  ;;  %v296_v28 = vpop.f32.mrf.mxu3 }
 0x196   :  { %v297_v36 = vadd.f32 %v1916_v42, %v296_v28  ;;  %v812_v40 = vsel %vm811_vm12, %v1615_v0, %v808_v35  ;;  %v820_v27 = vmul.f32 %v1619_v41, %v2160_v50  ;;  %v830_v42 = vand.u32 2147483648, %v2160_v50 }
 0x197   :  { %1622 = vrcp.f32 %v2185_v14  ;;  %v652_v45 = vrot.slane %v651_v46, 2  ;;  %v537_v57 = vsub.f32 %v2151_v26, %v509_v5  ;;  %v513_v58 = vrot.slane %v512_v48, 2 }
 0x198   :  { %v2195_v10 = vadd.f32 %v393_v56, %v297_v36  ;;  %v817_v37 = vsel %vm2181_vm11, %v816_v24, %v812_v40  ;;  %v821_v59 = vsub.f32 1.0, %v820_v27  ;;  %vm825_vm13 = vweird.f32 %v1619_v41 }
 0x199   :  { %v653_v32 = vadd.f32 %v652_v45, %v651_v46  ;;  %v566_v44 = vmul.f32 1.442695, %v537_v57  ;;  %v514_v60 = vmax.f32 %v512_v48, %v513_v58  ;;  %v2201_v0 = vmul.f32 %v2107_v47, %v817_v37  ;;  %vm826_vm15 = vmor %vm824_vm14, %vm825_vm13 }
 0x19a   :  { %v2203_v2 = vpop.eup %1620  ;;  %v517_v26 = vsel %vm411_vm2, %v2195_v10, -inf  ;;  %v822_v51 = vmul.f32 %v1619_v41, %v821_v59  ;;  %v831_v20 = vor.u32 1.1754944e-38, %v830_v42  ;;  %v843_v34 = vand.u32 2147483647, %v2185_v14 }
 0x19b   :  { %v654_v6 = vrot.slane %v653_v32, 1  ;;  %v656_v7 = vsel %vm411_vm2, %v2203_v2, 0.0  ;;  %1624 = vpow2.f32 %v566_v44  ;;  %v515_v62 = vrot.slane %v514_v60, 1  ;;  %1165 = vperm.xlu0 %1563, %v2201_v0  }
 0x19c   :  { %v657_v8 = vrot.slane %v656_v7, 4  ;;  %v518_v16 = vrot.slane %v517_v26, 4  ;;  %v823_v17 = vadd.f32 %v1619_v41, %v822_v51  ;;  %v845_v35 = vand.u32 2147483648, %v2185_v14 }
 0x19d   :  { %v1623_v47 = vpop.eup %1622  ;;  %v2211_v1 = vadd.f32 %v654_v6, %v653_v32  ;;  %v516_v19 = vmax.f32 %v514_v60, %v515_v62  ;;  %vm839_vm5 = vweird.f32 %v2185_v14  ;;  %vm844_vm7 = vcmp.eq.f32.partialorder %v843_v34, 8.507059e+37 }
 0x19e   :  { %v658_v52 = vadd.f32 %v657_v8, %v656_v7  ;;  %v519_v4 = vmax.f32 %v517_v26, %v518_v16  ;;  %v827_v21 = vsel %vm826_vm15, %v1619_v41, %v823_v17  ;;  %v835_v9 = vmul.f32 %v1623_v47, %v2185_v14 }
 0x19f   :  { %1626 = vrcp.f32 %v2211_v1  ;;  %v538_v22 = vsub.f32 %v2171_v53, %v516_v19  ;;  %v832_v63 = vsel %vm829_vm3, %v831_v20, %v827_v21  ;;  %vm840_vm4 = vweird.f32 %v1623_v47 }
 0x1a0   :  { %v659_v18 = vrot.slane %v658_v52, 2  ;;  %v520_v15 = vrot.slane %v519_v4, 2  ;;  %v2217_v50 = vmul.f32 %v2130_v3, %v832_v63  ;;  %v836_v61 = vsub.f32 1.0, %v835_v9  ;;  %vm841_vm6 = vmor %vm839_vm5, %vm840_vm4 }
 0x1a1   :  { %v2219_v29 = vpop.eup %1624  ;;  %v568_v31 = vmul.f32 1.442695, %v538_v22  ;;  %v846_v40 = vor.u32 1.1754944e-38, %v845_v35  ;;  %v858_v44 = vand.u32 2147483647, %v2211_v1  ;;  %v860_v60 = vand.u32 2147483648, %v2211_v1 }
 0x1a2   :  { %v660_v38 = vadd.f32 %v659_v18, %v658_v52  ;;  %v663_v24 = vsel %vm411_vm2, %v2219_v29, 0.0  ;;  %v521_v53 = vmax.f32 %v519_v4, %v520_v15  ;;  %1169 = vperm.xlu1 %1561, %v2217_v50   ;;  %v837_v41 = vmul.f32 %v1623_v47, %v836_v61 }
 0x1a3   :  { %v664_v46 = vrot.slane %v663_v24, 4  ;;  %1628 = vpow2.f32 %v568_v31  ;;  %vm854_vm9 = vweird.f32 %v2211_v1  ;;  %v861_v16 = vor.u32 1.1754944e-38, %v860_v60 }
 0x1a4   :  { %v661_v3 = vrot.slane %v660_v38, 1  ;;  %v522_v5 = vrot.slane %v521_v53, 1  ;;  %v838_v48 = vadd.f32 %v1623_v47, %v837_v41  ;;  %vm859_vm11 = vcmp.eq.f32.partialorder %v858_v44, 8.507059e+37 }
 0x1a5   :  { %v1627_v28 = vpop.eup %1626  ;;  %v665_v36 = vadd.f32 %v664_v46, %v663_v24 }
 0x1a6   :  { %v662_v27 = vadd.f32 %v661_v3, %v660_v38  ;;  %v523_v55 = vmax.f32 %v521_v53, %v522_v5  ;;  %v842_v56 = vsel %vm841_vm6, %v1623_v47, %v838_v48  ;;  %v850_v45 = vmul.f32 %v1627_v28, %v2211_v1 }
 0x1a7   :  { %v666_v57 = vrot.slane %v665_v36, 2  ;;  %v847_v58 = vsel %vm844_vm7, %v846_v40, %v842_v56  ;;  %vm855_vm8 = vweird.f32 %v1627_v28 }
 0x1a8   :  { %1630 = vrcp.f32 %v662_v27  ;;  %v539_v37 = vsub.f32 %v2195_v10, %v523_v55  ;;  %v2231_v59 = vmul.f32 %v2154_v12, %v847_v58  ;;  %v851_v14 = vsub.f32 1.0, %v850_v45  ;;  %vm856_vm10 = vmor %vm854_vm9, %vm855_vm8 }
 0x1a9   :  { %v2233_v42 = vpop.eup %1628  ;;  %v667_v32 = vadd.f32 %v666_v57, %v665_v36  ;;  %v873_v1 = vand.u32 2147483647, %v662_v27  ;;  %v875_v63 = vand.u32 2147483648, %v662_v27  ;;  %vm869_vm13 = vweird.f32 %v662_v27 }
 0x1aa   :  { %v670_v26 = vsel %vm411_vm2, %v2233_v42, 0.0  ;;  %v570_v51 = vmul.f32 1.442695, %v539_v37  ;;  %1173 = vperm.xlu1 %1561, %v2231_v59   ;;  %v852_v6 = vmul.f32 %v1627_v28, %v851_v14 }
 0x1ab   :  { %v668_v10 = vrot.slane %v667_v32, 1  ;;  %v671_v7 = vrot.slane %v670_v26, 4  ;;  %v876_v24 = vor.u32 1.1754944e-38, %v875_v63  ;;  %vm874_vm15 = vcmp.eq.f32.partialorder %v873_v1, 8.507059e+37 }
 0x1ac   :  { %1632 = vpow2.f32 %v570_v51  ;;  %v853_v12 = vadd.f32 %v1627_v28, %v852_v6 }
 0x1ad   :  { %v669_v62 = vadd.f32 %v668_v10, %v667_v32  ;;  %v672_v8 = vadd.f32 %v671_v7, %v670_v26 }
 0x1ae   :  { %v1631_v17 = vpop.eup %1630  ;;  %v857_v47 = vsel %vm856_vm10, %v1627_v28, %v853_v12 }
 0x1af   :  { %1634 = vrcp.f32 %v669_v62  ;;  %v673_v19 = vrot.slane %v672_v8, 2  ;;  %v862_v20 = vsel %vm859_vm11, %v861_v16, %v857_v47  ;;  %v865_v52 = vmul.f32 %v1631_v17, %v662_v27 }
 0x1b0   :  { %v2242_v4 = vmul.f32 %v2174_v49, %v862_v20  ;;  %vm870_vm12 = vweird.f32 %v1631_v17  ;;  %v890_v28 = vand.u32 2147483648, %v669_v62  ;;  %v888_v55 = vand.u32 2147483647, %v669_v62 }
 0x1b1   :  { %v674_v21 = vadd.f32 %v673_v19, %v672_v8  ;;  %v866_v9 = vsub.f32 1.0, %v865_v52  ;;  %vm871_vm14 = vmor %vm869_vm13, %vm870_vm12  ;;  %vm884_vm3 = vweird.f32 %v669_v62 }
 0x1b2   :  { %v2244_v22 = vpop.eup %1632  ;;  %1177 = vperm.xlu0 %1563, %v2242_v4   ;;  %v891_v57 = vor.u32 1.1754944e-38, %v890_v28  ;;  %vm889_vm5 = vcmp.eq.f32.partialorder %v888_v55, 8.507059e+37 }
 0x1b3   :  { %v675_v18 = vrot.slane %v674_v21, 1  ;;  %v677_v15 = vsel %vm411_vm2, %v2244_v22, 0.0  ;;  %v867_v61 = vmul.f32 %v1631_v17, %v866_v9 }
 0x1b4   :  { %v678_v31 = vrot.slane %v677_v15, 4 }
 0x1b5   :  { %v1635_v34 = vpop.eup %1634  ;;  %v676_v35 = vadd.f32 %v675_v18, %v674_v21  ;;  %v868_v38 = vadd.f32 %v1631_v17, %v867_v61  ;;  %v2286_v18 = vld [vmem:[%s2466_s0 + $0x10] sm:$0xff] }
 0x1b6   :  { %v679_v49 = vadd.f32 %v678_v31, %v677_v15  ;;  %v880_v53 = vmul.f32 %v1635_v34, %v669_v62  ;;  %vm885_vm2 = vweird.f32 %v1635_v34 }
 0x1b7   :  { %1636 = vrcp.f32 %v676_v35  ;;  %v872_v41 = vsel %vm871_vm14, %v1631_v17, %v868_v38  ;;  %vm886_vm4 = vmor %vm884_vm3, %vm885_vm2  ;;  %v905_v60 = vand.u32 2147483648, %v676_v35  ;;  %v903_v51 = vand.u32 2147483647, %v676_v35 }
 0x1b8   :  { %v680_v46 = vrot.slane %v679_v49, 2  ;;  %v877_v3 = vsel %vm874_vm15, %v876_v24, %v872_v41  ;;  %v881_v5 = vsub.f32 1.0, %v880_v53  ;;  %vm899_vm7 = vweird.f32 %v676_v35  ;;  %v2299_v53 = vld [vmem:[%s2466_s0 + $0x40] sm:$0xff] }
 0x1b9   :  { %v878_v48 = vmul.f32 %v2203_v2, %v877_v3  ;;  %v906_v10 = vor.u32 1.1754944e-38, %v905_v60  ;;  %vm904_vm9 = vcmp.eq.f32.partialorder %v903_v51, 8.507059e+37  ;;  %vm1340_vm14 = vcmask 1041409  }
 0x1ba   :  { %v681_v36 = vadd.f32 %v680_v46, %v679_v49  ;;  %v882_v40 = vmul.f32 %v1635_v34, %v881_v5  ;;  %v2293_v49 = vld [vmem:[%s2466_s0 + $0x48] sm:$0xff]  ;;  %v2305_v46 = vld [vmem:[%s2466_s0 + $0x50] sm:$0xff]  ;;  %vm1342_vm15 = vcmask 1042434   ;;  %vm1344_vm2 = vcmask 1043459  }
 0x1bb   :  { %1181 = vperm.xlu2 %1562, %v878_v48   ;;  %vm1346_vm3 = vcmask 1044484  }
 0x1bc   :  { %v682_v56 = vrot.slane %v681_v36, 1  ;;  %v883_v27 = vadd.f32 %v1635_v34, %v882_v40  ;;  %v2318_v40 = vld [vmem:[%s2466_s0 + $0x58] sm:$0xff] }
 0x1bd   :  { %v1637_v45 = vpop.eup %1636 }
 0x1be   :  { %v683_v58 = vadd.f32 %v682_v56, %v681_v36  ;;  %v887_v37 = vsel %vm886_vm4, %v1635_v34, %v883_v27  ;;  %v895_v14 = vmul.f32 %v1637_v45, %v676_v35  ;;  %vm900_vm6 = vweird.f32 %v1637_v45  ;;  %v2324_v27 = vld [vmem:[%s2466_s0 + $0x20] sm:$0xff] }
 0x1bf   :  { %v892_v32 = vsel %vm889_vm5, %v891_v57, %v887_v37  ;;  %vm901_vm8 = vmor %vm899_vm7, %vm900_vm6  ;;  %v2330_v57 = vld [vmem:[%s2466_s0 + $0x28] sm:$0xff]  ;;  %vm1348_vm4 = vcmask 1045509   ;;  %vm1350_vm5 = vcmask 1046534   ;;  %vm1352_vm6 = vcmask 1047559  }
 0x1c0   :  { %1638 = vrcp.f32 %v683_v58  ;;  %v893_v2 = vmul.f32 %v2219_v29, %v892_v32  ;;  %v896_v44 = vsub.f32 1.0, %v895_v14  ;;  %v920_v29 = vand.u32 2147483648, %v683_v58 }
 0x1c1   :  { %v918_v19 = vand.u32 2147483647, %v683_v58  ;;  %vm914_vm11 = vweird.f32 %v683_v58 }
 0x1c2   :  { %1185 = vperm.xlu1 %1561, %v893_v2   ;;  %v897_v26 = vmul.f32 %v1637_v45, %v896_v44  ;;  %v921_v52 = vor.u32 1.1754944e-38, %v920_v29 }
 0x1c3   :  { %vm919_vm13 = vcmp.eq.f32.partialorder %v918_v19, 8.507059e+37 }
 0x1c4   :  { %v898_v6 = vadd.f32 %v1637_v45, %v897_v26  ;;  %v2340_v26 = vld [vmem:[%s2466_s0 + $0x30] sm:$0xff] }
 0x1c6   :  { %v1639_v7 = vpop.eup %1638  ;;  %v902_v12 = vsel %vm901_vm8, %v1637_v45, %v898_v6 }
 0x1c7   :  { %v907_v62 = vsel %vm904_vm9, %v906_v10, %v902_v12  ;;  %v910_v8 = vmul.f32 %v1639_v7, %v683_v58  ;;  %vm915_vm10 = vweird.f32 %v1639_v7 }
 0x1c8   :  { %v908_v16 = vmul.f32 %v2233_v42, %v907_v62  ;;  %vm916_vm12 = vmor %vm914_vm11, %vm915_vm10 }
 0x1c9   :  { %v911_v17 = vsub.f32 1.0, %v910_v8 }
 0x1ca   :  { %1189 = vperm.xlu0 %1563, %v908_v16   ;;  %1564 = vset.pattern.permute.xlu1 %v1711_v30 }
 0x1cb   :  { %931 = vperm.xlu1 %1564, %v2011_v13   ;;  %v912_v47 = vmul.f32 %v1639_v7, %v911_v17  ;;  %v1134_v13 = vpop.permute.xlu1 %1133 }
 0x1cd   :  { %v913_v20 = vadd.f32 %v1639_v7, %v912_v47 }
 0x1cf   :  { %v917_v21 = vsel %vm916_vm12, %v1639_v7, %v913_v20  ;;  %v2347_v7 = vld [vmem:[%s2466_s0 + $0x60] sm:$0xff] }
 0x1d0   :  { %v922_v9 = vsel %vm919_vm13, %v921_v52, %v917_v21  ;;  %v2355_v52 = vld [vmem:[%s2466_s0 + $0x38] sm:$0xff] }
 0x1d1   :  { %v923_v1 = vmul.f32 %v2244_v22, %v922_v9 }
 0x1d2   :  { %1566 = vset.pattern.permute.xlu0 %v1711_v30 }
 0x1d3   :  { %1193 = vperm.xlu2 %1562, %v923_v1   ;;  %976 = vperm.xlu0 %1566, %v2231_v59  }
 0x1d4   :  { %971 = vperm.xlu1 %1564, %v2217_v50  }
 0x1db   :  { %1565 = vset.pattern.permute.xlu2 %v1711_v30  ;;  %946 = vperm.xlu0 %1566, %v2095_v25   ;;  %v1138_v30 = vpop.permute.xlu2 %1137 }
 0x1dc   :  { %966 = vperm.xlu2 %1565, %v2201_v0   ;;  %941 = vperm.xlu1 %1564, %v2065_v33   ;;  %v2268_v0 = vpop.permute.xlu0 %926 }
 0x1e3   :  { %991 = vperm.xlu0 %1566, %v893_v2   ;;  %v1142_v33 = vpop.permute.xlu2 %1141 }
 0x1e4   :  { %936 = vperm.xlu2 %1565, %v2036_v11   ;;  %986 = vperm.xlu1 %1564, %v878_v48   ;;  %v1198_v15 = vmul.f32 %v2286_v18, %v1142_v33  ;;  %v2312_v48 = vld [vmem:[%s2466_s0 + $0x18] sm:$0xff] }
 0x1e6   :  { %v1226_v5 = vsel %vm91_vm0, %v1198_v15, 0.0 }
 0x1e7   :  { %v1227_v14 = vrot.slane %v1226_v5, 4 }
 0x1e8   :  { %v1150_v25 = vpop.permute.xlu1 %1149 }
 0x1e9   :  { %v1200_v45 = vmul.f32 %v2324_v27, %v1150_v25  ;;  %v1228_v19 = vadd.f32 %v1227_v14, %v1226_v5  ;;  %v2371_v5 = vld [vmem:[%s2466_s0 + $0x68] sm:$0xff] }
 0x1eb   :  { %961 = vperm.xlu0 %1566, %v2163_v43   ;;  %v1146_v50 = vpop.permute.xlu2 %1145 }
 0x1ec   :  { %981 = vperm.xlu2 %1565, %v2242_v4   ;;  %956 = vperm.xlu1 %1564, %v2144_v39   ;;  %v2279_v39 = vld [vmem:[%s2466_s0] sm:$0xff]  ;;  %v1199_v28 = vmul.f32 %v2312_v48, %v1146_v50 }
 0x1ed   :  { %v1196_v22 = vmul.f32 %v2279_v39, %v1134_v13  ;;  %v2362_v13 = vld [vmem:[%s2466_s0 + $0x78] sm:$0xff] }
 0x1ee   :  { %v1154_v59 = vpop.permute.xlu0 %1153  ;;  %v1233_v44 = vsel %vm91_vm0, %v1199_v28, 0.0 }
 0x1ef   :  { %v1212_v34 = vsel %vm91_vm0, %v1196_v22, 0.0  ;;  %v1201_v58 = vmul.f32 %v2330_v57, %v1154_v59  ;;  %v1234_v20 = vrot.slane %v1233_v44, 4 }
 0x1f0   :  { %v1213_v36 = vrot.slane %v1212_v34, 4 }
 0x1f1   :  { %v1247_v17 = vsel %vm91_vm0, %v1201_v58, 0.0  ;;  %v1235_v22 = vadd.f32 %v1234_v20, %v1233_v44 }
 0x1f2   :  { %v1214_v60 = vadd.f32 %v1213_v36, %v1212_v34  ;;  %v1248_v50 = vrot.slane %v1247_v17, 4 }
 0x1f3   :  { %1572 = vset.pattern.permute.xlu0 %v1712_v23  ;;  %v1158_v42 = vpop.permute.xlu2 %1157  ;;  %v2273_v23 = vld [vmem:[%s2466_s0 + $0x8] sm:$0xff] }
 0x1f4   :  { %951 = vperm.xlu2 %1565, %v2115_v54   ;;  %1001 = vperm.xlu1 %1564, %v923_v1   ;;  %v1197_v54 = vmul.f32 %v2273_v23, %v1138_v30  ;;  %v1202_v51 = vmul.f32 %v2340_v26, %v1158_v42  ;;  %v1215_v1 = vrot.slane %v1214_v60, 2 }
 0x1f6   :  { %v1219_v63 = vsel %vm91_vm0, %v1197_v54, 0.0  ;;  %v1254_v30 = vsel %vm91_vm0, %v1202_v51, 0.0 }
 0x1f7   :  { %v1220_v31 = vrot.slane %v1219_v63, 4 }
 0x1f9   :  { %v1221_v56 = vadd.f32 %v1220_v31, %v1219_v63  ;;  %v1255_v31 = vrot.slane %v1254_v30, 4 }
 0x1fb   :  { %v1222_v10 = vrot.slane %v1221_v56, 2 }
 0x1fc   :  { %996 = vperm.xlu2 %1565, %v908_v16   ;;  %v1240_v16 = vsel %vm91_vm0, %v1200_v45, 0.0 }
 0x1fd   :  { %v1241_v33 = vrot.slane %v1240_v16, 4  ;;  %v1223_v42 = vadd.f32 %v1222_v10, %v1221_v56 }
 0x1ff   :  { %v1224_v36 = vrot.slane %v1223_v42, 1 }
 0x201   :  { %v1162_v11 = vpop.permute.xlu1 %1161 }
 0x202   :  { %v1203_v21 = vmul.f32 %v2355_v52, %v1162_v11  ;;  %v1229_v11 = vrot.slane %v1228_v19, 2 }
 0x204   :  { %v1261_v63 = vsel %vm91_vm0, %v1203_v21, 0.0  ;;  %v1230_v58 = vadd.f32 %v1229_v11, %v1228_v19 }
 0x206   :  { %v1231_v20 = vrot.slane %v1230_v58, 1 }
 0x20d   :  { %v1166_v4 = vpop.permute.xlu0 %1165 }
 0x20e   :  { %v1204_v41 = vmul.f32 %v2299_v53, %v1166_v4 }
 0x210   :  { %v1268_v32 = vsel %vm91_vm0, %v1204_v41, 0.0  ;;  %v1249_v41 = vadd.f32 %v1248_v50, %v1247_v17 }
 0x211   :  { %v1269_v29 = vrot.slane %v1268_v32, 4 }
 0x213   :  { %v1270_v4 = vadd.f32 %v1269_v29, %v1268_v32 }
 0x214   :  { %v1170_v43 = vpop.permute.xlu1 %1169 }
 0x215   :  { %v1182_v35 = vpop.permute.xlu2 %1181  ;;  %v1205_v24 = vmul.f32 %v2293_v49, %v1170_v43  ;;  %v1271_v56 = vrot.slane %v1270_v4, 2 }
 0x216   :  { %v1208_v12 = vmul.f32 %v2347_v7, %v1182_v35 }
 0x217   :  { %v1275_v37 = vsel %vm91_vm0, %v1205_v24, 0.0  ;;  %v1242_v24 = vadd.f32 %v1241_v33, %v1240_v16  ;;  %v1272_v16 = vadd.f32 %v1271_v56, %v1270_v4 }
 0x218   :  { %v1276_v62 = vrot.slane %v1275_v37, 4  ;;  %v1296_v59 = vsel %vm91_vm0, %v1208_v12, 0.0  ;;  %v1250_v12 = vrot.slane %v1249_v41, 2 }
 0x219   :  { %v1297_v34 = vrot.slane %v1296_v59, 4  ;;  %v1243_v10 = vrot.slane %v1242_v24, 2 }
 0x21a   :  { %v1277_v43 = vadd.f32 %v1276_v62, %v1275_v37 }
 0x21b   :  { %v1244_v11 = vadd.f32 %v1243_v10, %v1242_v24 }
 0x21c   :  { %v1174_v61 = vpop.permute.xlu1 %1173 }
 0x21d   :  { %v1206_v3 = vmul.f32 %v2305_v46, %v1174_v61  ;;  %v1216_v61 = vadd.f32 %v1215_v1, %v1214_v60  ;;  %v1298_v60 = vadd.f32 %v1297_v34, %v1296_v59 }
 0x21f   :  { %v1282_v2 = vsel %vm91_vm0, %v1206_v3, 0.0  ;;  %v1278_v3 = vrot.slane %v1277_v43, 2  ;;  %v1217_v44 = vrot.slane %v1216_v61, 1 }
 0x220   :  { %v1283_v47 = vrot.slane %v1282_v2, 4 }
 0x221   :  { %v1279_v62 = vadd.f32 %v1278_v3, %v1277_v43  ;;  %v1218_v1 = vadd.f32 %v1217_v44, %v1216_v61 }
 0x222   :  { %v1284_v54 = vadd.f32 %v1283_v47, %v1282_v2  ;;  %v1236_v2 = vrot.slane %v1235_v22, 2  ;;  %v1225_v47 = vadd.f32 %v1224_v36, %v1223_v42  ;;  %v1251_v42 = vadd.f32 %v1250_v12, %v1249_v41 }
 0x223   :  { %v1280_v34 = vrot.slane %v1279_v62, 1 }
 0x224   :  { %v1178_v38 = vpop.permute.xlu0 %1177  ;;  %v1285_v45 = vrot.slane %v1284_v54, 2 }
 0x225   :  { %v1207_v55 = vmul.f32 %v2318_v40, %v1178_v38  ;;  %v1281_v56 = vadd.f32 %v1280_v34, %v1279_v62 }
 0x226   :  { %v1286_v17 = vadd.f32 %v1285_v45, %v1284_v54  ;;  %v1273_v54 = vrot.slane %v1272_v16, 1  ;;  %v1252_v45 = vrot.slane %v1251_v42, 1 }
 0x227   :  { %v1289_v6 = vsel %vm91_vm0, %v1207_v55, 0.0  ;;  %v1262_v55 = vrot.slane %v1261_v63, 4 }
 0x228   :  { %v1290_v9 = vrot.slane %v1289_v6, 4 }
 0x22a   :  { %v1291_v15 = vadd.f32 %v1290_v9, %v1289_v6  ;;  %v1256_v6 = vadd.f32 %v1255_v31, %v1254_v30  ;;  %v1237_v9 = vadd.f32 %v1236_v2, %v1235_v22  ;;  %v2378_v30 = vld [vmem:[%s2466_s0 + $0x70] sm:$0xff]  ;;  %s1713_s0 = smov 32  }
 0x22c   :  { %v1292_v37 = vrot.slane %v1291_v15, 2  ;;  %v1257_v59 = vrot.slane %v1256_v6, 2 }
 0x22d   :  { %v1194_v8 = vpop.permute.xlu2 %1193 }
 0x22e   :  { %v1211_v25 = vmul.f32 %v2362_v13, %v1194_v8  ;;  %v1263_v8 = vadd.f32 %v1262_v55, %v1261_v63  ;;  %v1293_v19 = vadd.f32 %v1292_v37, %v1291_v15  ;;  %v1287_v63 = vrot.slane %v1286_v17, 1 }
 0x22f   :  { %v1258_v36 = vadd.f32 %v1257_v59, %v1256_v6  ;;  %v1245_v55 = vrot.slane %v1244_v11, 1  ;;  %v1253_v6 = vadd.f32 %v1252_v45, %v1251_v42 }
 0x230   :  { %v1317_v35 = vsel %vm91_vm0, %v1211_v25, 0.0  ;;  %v1299_v25 = vrot.slane %v1298_v60, 2  ;;  %v1264_v4 = vrot.slane %v1263_v8, 2  ;;  %v1294_v22 = vrot.slane %v1293_v19, 1 }
 0x231   :  { %v1318_v14 = vrot.slane %v1317_v35, 4  ;;  %v1288_v41 = vadd.f32 %v1287_v63, %v1286_v17 }
 0x232   :  { %v1300_v24 = vadd.f32 %v1299_v25, %v1298_v60  ;;  %v1265_v37 = vadd.f32 %v1264_v4, %v1263_v8  ;;  %v1295_v2 = vadd.f32 %v1294_v22, %v1293_v19  ;;  %v1246_v60 = vadd.f32 %v1245_v55, %v1244_v11 }
 0x233   :  { %v1319_v21 = vadd.f32 %v1318_v14, %v1317_v35  ;;  %v1232_v35 = vadd.f32 %v1231_v20, %v1230_v58 }
 0x234   :  { %v1186_v38 = vpop.permute.xlu1 %1185  ;;  %v1301_v58 = vrot.slane %v1300_v24, 1  ;;  %v1266_v62 = vrot.slane %v1265_v37, 1 }
 0x235   :  { %v1209_v28 = vmul.f32 %v2371_v5, %v1186_v38  ;;  %v1320_v15 = vrot.slane %v1319_v21, 2  ;;  %v1238_v38 = vrot.slane %v1237_v9, 1 }
 0x237   :  { %v1303_v32 = vsel %vm91_vm0, %v1209_v28, 0.0  ;;  %v1379_v28 = vsel %vm1340_vm14, %v1225_v47, %v1218_v1  ;;  %v1321_v44 = vadd.f32 %v1320_v15, %v1319_v21  ;;  %v1239_v10 = vadd.f32 %v1238_v38, %v1237_v9 }
 0x238   :  { %v1304_v51 = vrot.slane %v1303_v32, 4  ;;  %v1380_v12 = vsel %vm1342_vm15, %v1232_v35, %v1379_v28  ;;  %v1259_v47 = vrot.slane %v1258_v36, 1  ;;  %v1302_v9 = vadd.f32 %v1301_v58, %v1300_v24  ;;  %v1541_v35 = vld [vmem:[%s2472_s6 + $0x10] sm:$0xff]  ;;  %v1540_v24 = vld [vmem:[%s2472_s6 + $0x8] sm:$0xff] }
 0x239   :  { %v1322_v19 = vrot.slane %v1321_v44, 1  ;;  %v1381_v25 = vsel %vm1344_vm2, %v1239_v10, %v1380_v12 }
 0x23a   :  { %v1305_v29 = vadd.f32 %v1304_v51, %v1303_v32  ;;  %v1274_v32 = vadd.f32 %v1273_v54, %v1272_v16 }
 0x23b   :  { %v1323_v42 = vadd.f32 %v1322_v19, %v1321_v44 }
 0x23c   :  { %v1306_v33 = vrot.slane %v1305_v29, 2  ;;  %v1190_v50 = vpop.permute.xlu0 %1189  ;;  %v1386_v20 = vsel %vm1340_vm14, %v1281_v56, %v1274_v32  ;;  %v1004_v32 = vmul.f32 %v2279_v39, %v2268_v0 }
 0x23d   :  { %v1210_v43 = vmul.f32 %v2378_v30, %v1190_v50  ;;  %v1387_v8 = vsel %vm1342_vm15, %v1288_v41, %v1386_v20  ;;  %v1267_v50 = vadd.f32 %v1266_v62, %v1265_v37  ;;  %v932_v38 = vpop.permute.xlu1 %931 }
 0x23e   :  { %v1307_v61 = vadd.f32 %v1306_v33, %v1305_v29  ;;  %v1388_v16 = vsel %vm1344_vm2, %v1295_v2, %v1387_v8  ;;  %v1382_v33 = vsel %vm1346_vm3, %v1246_v60, %v1381_v25  ;;  %v1005_v2 = vmul.f32 %v2273_v23, %v932_v38 }
 0x23f   :  { %v1310_v31 = vsel %vm91_vm0, %v1210_v43, 0.0  ;;  %v1383_v11 = vsel %vm1348_vm4, %v1253_v6, %v1382_v33  ;;  %v1389_v34 = vsel %vm1346_vm3, %v1302_v9, %v1388_v16  ;;  %v1260_v43 = vadd.f32 %v1259_v47, %v1258_v36  ;;  %v967_v36 = vpop.permute.xlu2 %966 }
 0x240   :  { %v1311_v3 = vrot.slane %v1310_v31, 4  ;;  %v1308_v51 = vrot.slane %v1307_v61, 1  ;;  %v1020_v44 = vsel %vm91_vm0, %v1004_v32, 0.0 }
 0x241   :  { %v1384_v63 = vsel %vm1350_vm5, %v1260_v43, %v1383_v11  ;;  %v1021_v58 = vrot.slane %v1020_v44, 4 }
 0x242   :  { %v1312_v14 = vadd.f32 %v1311_v3, %v1310_v31  ;;  %v1309_v21 = vadd.f32 %v1308_v51, %v1307_v61  ;;  %v1385_v15 = vsel %vm1352_vm6, %v1267_v50, %v1384_v63  ;;  %v1542_v31 = vld [vmem:[%s2472_s6 + $0x18] sm:$0xff]  ;;  %v1539_v3 = vld [vmem:[%s2472_s6] sm:$0xff]  ;;  %v1012_v51 = vmul.f32 %v2299_v53, %v967_v36 }
 0x243   :  { %1445 = vmatpush.bf16.msrb.mxu2 %v1542_v31 }
 0x244   :  { %v1313_v29 = vrot.slane %v1312_v14, 2  ;;  %v1390_v4 = vsel %vm1348_vm4, %v1309_v21, %v1389_v34  ;;  %v1076_v62 = vsel %vm91_vm0, %v1012_v51, 0.0 }
 0x245   :  { %v977_v55 = vpop.permute.xlu0 %976 }
 0x246   :  { %v1314_v17 = vadd.f32 %v1313_v29, %v1312_v14  ;;  %v972_v28 = vpop.permute.xlu1 %971  ;;  %v1027_v29 = vsel %vm91_vm0, %v1005_v2, 0.0  ;;  %v1014_v60 = vmul.f32 %v2305_v46, %v977_v55 }
 0x247   :  { %1446 = vmatpush.bf16.msrb.mxu2 %v1541_v35  ;;  %v937_v45 = vpop.permute.xlu2 %936  ;;  %v1013_v10 = vmul.f32 %v2293_v49, %v972_v28  ;;  %v1028_v8 = vrot.slane %v1027_v29, 4  ;;  %v1022_v49 = vadd.f32 %v1021_v58, %v1020_v44 }
 0x248   :  { %v1315_v1 = vrot.slane %v1314_v17, 1  ;;  %v1006_v12 = vmul.f32 %v2286_v18, %v937_v45  ;;  %v1090_v18 = vsel %vm91_vm0, %v1014_v60, 0.0 }
 0x249   :  { %v1083_v0 = vsel %vm91_vm0, %v1013_v10, 0.0  ;;  %v1029_v21 = vadd.f32 %v1028_v8, %v1027_v29  ;;  %v1023_v33 = vrot.slane %v1022_v49, 2 }
 0x24a   :  { %v1316_v59 = vadd.f32 %v1315_v1, %v1314_v17  ;;  %v1034_v39 = vsel %vm91_vm0, %v1006_v12, 0.0  ;;  %v1077_v17 = vrot.slane %v1076_v62, 4  ;;  %v1084_v47 = vrot.slane %v1083_v0, 4 }
 0x24b   :  { %1447 = vmatpush.bf16.msrb.mxu2 %v1540_v24  ;;  %v1035_v46 = vrot.slane %v1034_v39, 4  ;;  %v1091_v1 = vrot.slane %v1090_v18, 4 }
 0x24c   :  { %v1391_v54 = vsel %vm1350_vm5, %v1316_v59, %v1390_v4  ;;  %v1078_v50 = vadd.f32 %v1077_v17, %v1076_v62  ;;  %v1085_v59 = vadd.f32 %v1084_v47, %v1083_v0 }
 0x24d   :  { %v1392_v22 = vsel %vm1352_vm6, %v1323_v42, %v1391_v54  ;;  %v947_v37 = vpop.permute.xlu0 %946  ;;  %v1036_v34 = vadd.f32 %v1035_v46, %v1034_v39  ;;  %v1030_v54 = vrot.slane %v1029_v21, 2  ;;  %v1092_v63 = vadd.f32 %v1091_v1, %v1090_v18 }
 0x24e   :  { %v1567_v61 = vpack.i.bf16 %v1392_v22, %v1385_v15  ;;  %v942_v56 = vpop.permute.xlu1 %941  ;;  %v1008_v16 = vmul.f32 %v2324_v27, %v947_v37  ;;  %v1079_v31 = vrot.slane %v1078_v50, 2  ;;  %v1086_v35 = vrot.slane %v1085_v59, 2 }
 0x24f   :  { %1448 = vmatpush.bf16.msrb.mxu2 %v1539_v3  ;;  %v982_v14 = vpop.permute.xlu2 %981  ;;  %v1007_v53 = vmul.f32 %v2312_v48, %v942_v56  ;;  %v1037_v45 = vrot.slane %v1036_v34, 2  ;;  %v1093_v37 = vrot.slane %v1092_v63, 2 }
 0x250   :  { %1568 = vrot.lane.b32.xlu2 %v1567_v61, %s1713_s0  ;;  %v1015_v9 = vmul.f32 %v2318_v40, %v982_v14  ;;  %v1048_v48 = vsel %vm91_vm0, %v1008_v16, 0.0  ;;  %v1024_v61 = vadd.f32 %v1023_v33, %v1022_v49  ;;  %v1080_v14 = vadd.f32 %v1079_v31, %v1078_v50 }
 0x251   :  { %v1041_v25 = vsel %vm91_vm0, %v1007_v53, 0.0  ;;  %v1049_v38 = vrot.slane %v1048_v48, 4  ;;  %v1087_v32 = vadd.f32 %v1086_v35, %v1085_v59  ;;  %v1094_v62 = vadd.f32 %v1093_v37, %v1092_v63 }
 0x252   :  { %v1042_v43 = vrot.slane %v1041_v25, 4  ;;  %v1097_v40 = vsel %vm91_vm0, %v1015_v9, 0.0  ;;  %v1025_v60 = vrot.slane %v1024_v61, 1  ;;  %v1081_v47 = vrot.slane %v1080_v14, 1 }
 0x253   :  { %v1050_v2 = vadd.f32 %v1049_v38, %v1048_v48  ;;  %v1088_v0 = vrot.slane %v1087_v32, 1 }
 0x254   :  { %v1043_v36 = vadd.f32 %v1042_v43, %v1041_v25  ;;  %v1095_v25 = vrot.slane %v1094_v62, 1 }
 0x255   :  { %v992_v20 = vpop.permute.xlu0 %991  ;;  %v1051_v53 = vrot.slane %v1050_v2, 2  ;;  %v1089_v33 = vadd.f32 %v1088_v0, %v1087_v32 }
 0x256   :  { %v987_v41 = vpop.permute.xlu1 %986  ;;  %v1017_v11 = vmul.f32 %v2371_v5, %v992_v20  ;;  %v1038_v20 = vadd.f32 %v1037_v45, %v1036_v34 }
 0x257   :  { %v952_v23 = vpop.permute.xlu2 %951  ;;  %v1016_v19 = vmul.f32 %v2347_v7, %v987_v41 }
 0x258   :  { %v1009_v22 = vmul.f32 %v2330_v57, %v952_v23  ;;  %v1111_v5 = vsel %vm91_vm0, %v1017_v11, 0.0  ;;  %v1031_v57 = vadd.f32 %v1030_v54, %v1029_v21  ;;  %v1026_v21 = vadd.f32 %v1025_v60, %v1024_v61 }
 0x259   :  { %v1104_v27 = vsel %vm91_vm0, %v1016_v19, 0.0  ;;  %v1112_v44 = vrot.slane %v1111_v5, 4  ;;  %v1039_v9 = vrot.slane %v1038_v20, 1  ;;  %v1052_v11 = vadd.f32 %v1051_v53, %v1050_v2 }
 0x25a   :  { %v1105_v24 = vrot.slane %v1104_v27, 4  ;;  %v1055_v41 = vsel %vm91_vm0, %v1009_v22, 0.0  ;;  %v1096_v22 = vadd.f32 %v1095_v25, %v1094_v62 }
 0x25b   :  { %v1056_v58 = vrot.slane %v1055_v41, 4  ;;  %v1113_v23 = vadd.f32 %v1112_v44, %v1111_v5  ;;  %v1053_v38 = vrot.slane %v1052_v11, 1 }
 0x25c   :  { %v1106_v51 = vadd.f32 %v1105_v24, %v1104_v27 }
 0x25d   :  { %v962_v42 = vpop.permute.xlu0 %961  ;;  %v1057_v46 = vadd.f32 %v1056_v58, %v1055_v41  ;;  %v1114_v50 = vrot.slane %v1113_v23, 2  ;;  %v1054_v41 = vadd.f32 %v1053_v38, %v1052_v11 }
 0x25e   :  { %v957_v6 = vpop.permute.xlu1 %956  ;;  %v1011_v3 = vmul.f32 %v2355_v52, %v962_v42  ;;  %v1107_v17 = vrot.slane %v1106_v51, 2  ;;  %v1082_v42 = vadd.f32 %v1081_v47, %v1080_v14 }
 0x25f   :  { %v1010_v7 = vmul.f32 %v2340_v26, %v957_v6  ;;  %v997_v15 = vpop.permute.xlu2 %996  ;;  %v1098_v26 = vrot.slane %v1097_v40, 4  ;;  %v1032_v6 = vrot.slane %v1031_v57, 1  ;;  %v1115_v61 = vadd.f32 %v1114_v50, %v1113_v23 }
 0x260   :  { %v1018_v55 = vmul.f32 %v2378_v30, %v997_v15  ;;  %v1069_v52 = vsel %vm91_vm0, %v1011_v3, 0.0  ;;  %v1044_v30 = vrot.slane %v1043_v36, 2  ;;  %v1108_v43 = vadd.f32 %v1107_v17, %v1106_v51 }
 0x261   :  { %v1062_v56 = vsel %vm91_vm0, %v1010_v7, 0.0  ;;  %v1099_v12 = vadd.f32 %v1098_v26, %v1097_v40  ;;  %v1070_v39 = vrot.slane %v1069_v52, 4  ;;  %v1033_v1 = vadd.f32 %v1032_v6, %v1031_v57 }
 0x262   :  { %v1063_v10 = vrot.slane %v1062_v56, 4  ;;  %v1118_v29 = vsel %vm91_vm0, %v1018_v55, 0.0  ;;  %v1045_v19 = vadd.f32 %v1044_v30, %v1043_v36  ;;  %v1040_v40 = vadd.f32 %v1039_v9, %v1038_v20 }
 0x263   :  { %v1119_v49 = vrot.slane %v1118_v29, 4  ;;  %v1100_v16 = vrot.slane %v1099_v12, 2  ;;  %v1071_v59 = vadd.f32 %v1070_v39, %v1069_v52  ;;  %v1341_v63 = vsel %vm1340_vm14, %v1033_v1, %v1026_v21  ;;  %v1575_v1 = vld [vmem:[%s2473_s7] ss:$0 sm:$0xff] }
 0x264   :  { %v1064_v18 = vadd.f32 %v1063_v10, %v1062_v56  ;;  %v1046_v54 = vrot.slane %v1045_v19, 1  ;;  %v1354_v15 = vsel %vm1340_vm14, %v1089_v33, %v1082_v42  ;;  %v1109_v24 = vrot.slane %v1108_v43, 1 }
 0x265   :  { %v1120_v34 = vadd.f32 %v1119_v49, %v1118_v29  ;;  %v1101_v7 = vadd.f32 %v1100_v16, %v1099_v12  ;;  %v1072_v31 = vrot.slane %v1071_v59, 2  ;;  %v1343_v55 = vsel %vm1342_vm15, %v1040_v40, %v1341_v63 }
 0x266   :  { %v1002_v4 = vpop.permute.xlu1 %1001  ;;  %v1065_v27 = vrot.slane %v1064_v18, 2  ;;  %v1047_v36 = vadd.f32 %v1046_v54, %v1045_v19  ;;  %v1355_v56 = vsel %vm1342_vm15, %v1096_v22, %v1354_v15  ;;  %v1116_v45 = vrot.slane %v1115_v61, 1 }
 0x267   :  { %v1019_v28 = vmul.f32 %v2362_v13, %v1002_v4  ;;  %v1058_v4 = vrot.slane %v1057_v46, 2  ;;  %v1121_v5 = vrot.slane %v1120_v34, 2  ;;  %v1073_v57 = vadd.f32 %v1072_v31, %v1071_v59 }
 0x268   :  { %v1066_v3 = vadd.f32 %v1065_v27, %v1064_v18  ;;  %v1110_v32 = vadd.f32 %v1109_v24, %v1108_v43  ;;  %v1345_v52 = vsel %vm1344_vm2, %v1047_v36, %v1343_v55  ;;  %v1117_v10 = vadd.f32 %v1116_v45, %v1115_v61 }
 0x269   :  { %v1125_v13 = vsel %vm91_vm0, %v1019_v28, 0.0  ;;  %v1102_v28 = vrot.slane %v1101_v7, 1  ;;  %v1059_v26 = vadd.f32 %v1058_v4, %v1057_v46  ;;  %v1122_v14 = vadd.f32 %v1121_v5, %v1120_v34 }
 0x26a   :  { %v1126_v8 = vrot.slane %v1125_v13, 4  ;;  %v1067_v2 = vrot.slane %v1066_v3, 1  ;;  %v1074_v12 = vrot.slane %v1073_v57, 1  ;;  %v1347_v20 = vsel %vm1346_vm3, %v1054_v41, %v1345_v52 }
 0x26b   :  { %v1103_v44 = vadd.f32 %v1102_v28, %v1101_v7  ;;  %v1060_v51 = vrot.slane %v1059_v26, 1  ;;  %v1123_v30 = vrot.slane %v1122_v14, 1 }
 0x26c   :  { %v1127_v48 = vadd.f32 %v1126_v8, %v1125_v13  ;;  %v1068_v60 = vadd.f32 %v1067_v2, %v1066_v3  ;;  %v1075_v62 = vadd.f32 %v1074_v12, %v1073_v57 }
 0x26d   :  { %v1356_v13 = vsel %vm1344_vm2, %v1103_v44, %v1355_v56  ;;  %v1061_v6 = vadd.f32 %v1060_v51, %v1059_v26  ;;  %v1124_v8 = vadd.f32 %v1123_v30, %v1122_v14 }
 0x26e   :  { %v1128_v35 = vrot.slane %v1127_v48, 2  ;;  %v1357_v29 = vsel %vm1346_vm3, %v1110_v32, %v1356_v13 }
 0x26f   :  { %v1349_v23 = vsel %vm1348_vm4, %v1061_v6, %v1347_v20  ;;  %v1358_v39 = vsel %vm1348_vm4, %v1117_v10, %v1357_v29 }
 0x270   :  { %v1129_v37 = vadd.f32 %v1128_v35, %v1127_v48  ;;  %v1351_v53 = vsel %vm1350_vm5, %v1068_v60, %v1349_v23  ;;  %v1359_v47 = vsel %vm1350_vm5, %v1124_v8, %v1358_v39 }
 0x271   :  { %v1353_v16 = vsel %vm1352_vm6, %v1075_v62, %v1351_v53 }
 0x272   :  { %v1130_v58 = vrot.slane %v1129_v37, 1 }
 0x274   :  { %v1131_v0 = vadd.f32 %v1130_v58, %v1129_v37 }
 0x276   :  { %v1360_v46 = vsel %vm1352_vm6, %v1131_v0, %v1359_v47 }
 0x2aa   :  { %v1569_v49 = vpop.permute.xlu2 %1568 }
 0x2ab   :  { %v1571_v17 = vunpack.i.h.bf16 %v1569_v49  ;;  %v1570_v18 = vunpack.i.l.bf16 %v1569_v49 }
 0x2ad   :  { %v1399_v19 = vsel %vm91_vm0, %v1353_v16, %v1570_v18  ;;  %v1400_v21 = vsel %vm91_vm0, %v1360_v46, %v1571_v17 }
 0x2ae   :  { %v1401_v9 = vpack.c.bf16 %v1400_v21, %v1399_v19 }
 0x2b0   :  { %1532 = vmatmul.msk.bf16.vlgmr.msrb.gmra.mxu2 %vm225_vm1, %v1401_v9 }
 0x333   :  { %v1450_v25 = vpop.f32.mrf.mxu2 }
 0x334   :  { %v1451_v33 = vadd.f32 %v1575_v1, %v1450_v25 }
 0x336   :  { %1455 = vst.msk [vmem:[#allocation5] sm:$0xff] %vm225_vm1, %v1451_v33 }
 0x33b   :  { %v1452_v50 = vpop.f32.mrf.mxu2 }
 0x33c   :  { %v1453_v59 = vadd.f32 %v1575_v1, %v1452_v50 }
 0x33e   :  { %1456 = vst.msk [vmem:[#allocation5 + $0x8] sm:$0xff] %vm225_vm1, %v1453_v59 }
 0x33f   :  { %1469 = dma.vmem_to_hbm [thread:$0]  %s1462_s27, 256, %s1464_s30, [#allocation4], %s1715_s9, %s1715_s9, %s1716_s4  }
 0x340   :  { %1706 = dma.done.wait [#allocation4], 256  }
 0x341   :  { %1707 = vsyncadd [#allocation4], 4294967040 }
 0x342   :  { %1474 = vsyncpa [#allocation3], 1 }
 0x343   :  { %1475 = vsyncpa [#allocation4], 1 }

</bundles_post_ra>
